<compile_context>
chip_gen: v5e
topology: v5e:2x2
jax: 0.10.0
libtpu: 0.0.40
codegen_flags: <defaults>
</compile_context>

<pallas_src>
import functools

import jax
import jax.numpy as jnp
from jax import lax
from jax.experimental import pallas as pl
from jax.experimental.pallas import tpu as pltpu


# ---------------------------------------------------------------------------
# In-kernel helpers (all f32)
# ---------------------------------------------------------------------------
def _layer_norm(x, gamma, beta, eps=1e-5):
    mu = jnp.mean(x, axis=-1, keepdims=True)
    var = jnp.mean((x - mu) ** 2, axis=-1, keepdims=True)
    return (x - mu) * lax.rsqrt(var + eps) * gamma + beta


# ---------------------------------------------------------------------------
# Fused encoder kernel: num_layers shared-weight layers + final LayerNorm
# ---------------------------------------------------------------------------
def encoder_kernel(
    x_ref,
    wqkv_ref, bqkv_ref, wo_ref, bo_ref,
    ln1_g_ref, ln1_b_ref, w1_ref, b1_ref, w2_ref, b2_ref, ln2_g_ref, ln2_b_ref,
    fg_ref, fb_ref,
    o_ref,
    *, num_layers, nhead, bb, seq,
):
    D = o_ref.shape[-1]
    dh = D // nhead
    N = bb * seq                                  # activation rows in this block

    x0 = x_ref[...]                               # (N, D) f32 — no in-kernel relayout

    # Shared weights: hoisted once, reused by every layer (and every head).
    wqkv, bqkv = wqkv_ref[...], bqkv_ref[...]     # (D, 3D) bf16 / (1, 3D) f32
    wo, bo = wo_ref[...], bo_ref[...]
    ln1_g, ln1_b = ln1_g_ref[...], ln1_b_ref[...]
    ln2_g, ln2_b = ln2_g_ref[...], ln2_b_ref[...]
    w1, b1 = w1_ref[...], b1_ref[...]
    w2, b2 = w2_ref[...], b2_ref[...]

    def attention(x2):
        xb = x2.astype(jnp.bfloat16)
        # ONE fused QKV projection (full-width N=3D) — replaces 3*nhead dh-wide dots.
        qkv = jnp.dot(xb, wqkv, preferred_element_type=jnp.float32) + bqkv  # (N, 3D)
        heads = []
        # TODO(synk): at real d_head/S, batch the score/PV matmuls over heads
        # (multi-batch dot_general) and tile KV with an online-softmax instead of
        # this static per-head loop + full (S,S) f32 score tensor.
        for h in range(nhead):
            q3 = qkv[:, h * dh:(h + 1) * dh].reshape(bb, seq, dh).astype(jnp.bfloat16)
            k3 = qkv[:, D + h * dh:D + (h + 1) * dh].reshape(bb, seq, dh).astype(jnp.bfloat16)
            v3 = qkv[:, 2 * D + h * dh:2 * D + (h + 1) * dh].reshape(bb, seq, dh).astype(jnp.bfloat16)
            # 1/sqrt(d_head) already folded into Wq/bq on the host.
            s = jnp.einsum("bqd,bkd->bqk", q3, k3,
                           preferred_element_type=jnp.float32)        # (bb,S,S) f32
            s = s - jnp.max(s, axis=-1, keepdims=True)
            p = jnp.exp(s)
            p = p * pl.reciprocal(jnp.sum(p, axis=-1, keepdims=True), approx=True)
            oh = jnp.einsum("bqk,bkd->bqd", p.astype(jnp.bfloat16), v3,
                            preferred_element_type=jnp.float32)        # (bb,S,dh)
            heads.append(oh.reshape(N, dh))
        # Concat heads along lanes, then ONE full-K (K=D) output projection —
        # no per-head K=dh accumulation passes.
        o_all = jnp.concatenate(heads, axis=-1).astype(jnp.bfloat16)   # (N, D)
        return jnp.dot(o_all, wo, preferred_element_type=jnp.float32) + bo

    def layer_body(_, x2):
        attn = attention(x2)
        x1 = _layer_norm(x2 + attn, ln1_g, ln1_b)                       # f32 LN
        ff = jnp.dot(x1.astype(jnp.bfloat16), w1,
                     preferred_element_type=jnp.float32) + b1
        ff = jnp.maximum(ff, 0.0)
        ff = jnp.dot(ff.astype(jnp.bfloat16), w2,
                     preferred_element_type=jnp.float32) + b2
        return _layer_norm(x1 + ff, ln2_g, ln2_b)

    # Shared-weight layer stack fused in-kernel (no HBM round trips between
    # layers).  Unroll only for shallow stacks; keep rolled when deep.
    y = lax.fori_loop(0, num_layers, layer_body, x0, unroll=(num_layers <= 4))

    # Final LayerNorm of the Encoder module.
    o_ref[...] = _layer_norm(y, fg_ref[...], fb_ref[...])


# ---------------------------------------------------------------------------
# Host-side parameter preparation (done once; weights shared across layers)
# ---------------------------------------------------------------------------
def prepare_params(layer_params, final_norm_params, nhead):
    D = layer_params["wq"].shape[0]
    dh = D // nhead
    scale = 1.0 / (dh ** 0.5)
    bf16, f32 = jnp.bfloat16, jnp.float32
    # Fused QKV weight: columns [Wq*scale | Wk | Wv]; 1/sqrt(d_head) folded into Q.
    wqkv = jnp.concatenate(
        [layer_params["wq"] * scale, layer_params["wk"], layer_params["wv"]],
        axis=1).astype(bf16)
    bqkv = jnp.concatenate(
        [layer_params["bq"] * scale, layer_params["bk"], layer_params["bv"]],
        axis=1).astype(f32)
    return (
        wqkv, bqkv,
        layer_params["wo"].astype(bf16), layer_params["bo"].astype(f32),
        layer_params["ln1_g"].astype(f32), layer_params["ln1_b"].astype(f32),
        layer_params["w1"].astype(bf16), layer_params["b1"].astype(f32),
        layer_params["w2"].astype(bf16), layer_params["b2"].astype(f32),
        layer_params["ln2_g"].astype(f32), layer_params["ln2_b"].astype(f32),
        final_norm_params["g"].astype(f32), final_norm_params["b"].astype(f32),
    )


# ---------------------------------------------------------------------------
# Forward: one pallas_call with a parallel batch grid
# ---------------------------------------------------------------------------
@functools.partial(jax.jit, static_argnames=("num_layers", "nhead", "bb"))
def encoder_forward(x, flat_params, num_layers, nhead, bb=1):
    B, S, D = x.shape
    assert B % bb == 0
    x2 = x.reshape(B * S, D)            # wrapper-side reshape: free HBM metadata
    nb = bb * S                         # activation rows per grid step

    act_spec = pl.BlockSpec((nb, D), lambda i: (i, 0))
    # Weights: full arrays with constant index_maps -> DMA'd once, then resident.
    w_specs = [pl.BlockSpec(p.shape, lambda i, _nd=p.ndim: (0,) * _nd)
               for p in flat_params]

    kernel = functools.partial(
        encoder_kernel, num_layers=num_layers, nhead=nhead, bb=bb, seq=S)
    call = pl.pallas_call(
        kernel,
        out_shape=jax.ShapeDtypeStruct((B * S, D), jnp.float32),
        grid=(B // bb,),
        in_specs=[act_spec] + w_specs,
        out_specs=act_spec,
        compiler_params=pltpu.CompilerParams(
            dimension_semantics=("parallel",),       # megacore split on v7x
            vmem_limit_bytes=48 * 1024 * 1024,       # headroom vs v7x 64 MiB VMEM
        ),
    )
    return call(x2, *flat_params).reshape(B, S, D)


# ---------------------------------------------------------------------------
# Main
# ---------------------------------------------------------------------------
if __name__ == "__main__":
    B, S, D, F, NHEAD, NUM_LAYERS = 2, 8, 32, 64, 4, 2

    key = jax.random.PRNGKey(0)
    keys = jax.random.split(key, 8)

    def w(k, shape, scale=0.02):
        return (scale * jax.random.normal(k, shape)).astype(jnp.float32)

    # Weights stored as (in, out) so the kernel uses x @ W (equivalent to
    # PyTorch's x @ W.T with W of shape (out, in) — synthetic init, same math).
    layer_params = {
        "wq": w(keys[0], (D, D)), "bq": jnp.zeros((1, D), jnp.float32),
        "wk": w(keys[1], (D, D)), "bk": jnp.zeros((1, D), jnp.float32),
        "wv": w(keys[2], (D, D)), "bv": jnp.zeros((1, D), jnp.float32),
        "wo": w(keys[3], (D, D)), "bo": jnp.zeros((1, D), jnp.float32),
        "ln1_g": jnp.ones((1, D), jnp.float32),
        "ln1_b": jnp.zeros((1, D), jnp.float32),
        "w1": w(keys[4], (D, F)), "b1": jnp.zeros((1, F), jnp.float32),
        "w2": w(keys[5], (F, D)), "b2": jnp.zeros((1, D), jnp.float32),
        "ln2_g": jnp.ones((1, D), jnp.float32),
        "ln2_b": jnp.zeros((1, D), jnp.float32),
    }
    final_norm_params = {
        "g": jnp.ones((1, D), jnp.float32),
        "b": jnp.zeros((1, D), jnp.float32),
    }

    x = jax.random.normal(keys[6], (B, S, D), dtype=jnp.float32)

    flat = prepare_params(layer_params, final_norm_params, NHEAD)
    out = encoder_forward(x, flat, NUM_LAYERS, NHEAD)
    out = jax.block_until_ready(out)

    assert out.shape == (B, S, D)
    assert jnp.all(jnp.isfinite(out))
    print("KERNEL_OK")
</pallas_src>

<mosaic_0001>
module attributes {stable_mosaic.version = 11 : i64} {
  func.func @encoder_kernel(%arg0: i32, %arg1: memref<8x32xf32, #tpu.memory_space<vmem>>, %arg2: memref<32x96xbf16, #tpu.memory_space<vmem>>, %arg3: memref<1x96xf32, #tpu.memory_space<vmem>>, %arg4: memref<32x32xbf16, #tpu.memory_space<vmem>>, %arg5: memref<1x32xf32, #tpu.memory_space<vmem>>, %arg6: memref<1x32xf32, #tpu.memory_space<vmem>>, %arg7: memref<1x32xf32, #tpu.memory_space<vmem>>, %arg8: memref<32x64xbf16, #tpu.memory_space<vmem>>, %arg9: memref<1x64xf32, #tpu.memory_space<vmem>>, %arg10: memref<64x32xbf16, #tpu.memory_space<vmem>>, %arg11: memref<1x32xf32, #tpu.memory_space<vmem>>, %arg12: memref<1x32xf32, #tpu.memory_space<vmem>>, %arg13: memref<1x32xf32, #tpu.memory_space<vmem>>, %arg14: memref<1x32xf32, #tpu.memory_space<vmem>>, %arg15: memref<1x32xf32, #tpu.memory_space<vmem>>, %arg16: memref<8x32xf32, #tpu.memory_space<vmem>>) attributes {dimension_semantics = [#tpu.dimension_semantics<parallel>], iteration_bounds = array<i64: 2>, scalar_prefetch = 0 : i64, scratch_operands = 0 : i64, tpu.core_type = #tpu.core_type<tc>, window_params = [{transform_indices = @transform_0, window_bounds = array<i64: 8, 32>}, {pipeline_mode = #tpu.pipeline_mode<synchronous>, transform_indices = @transform_1, window_bounds = array<i64: 32, 96>}, {pipeline_mode = #tpu.pipeline_mode<synchronous>, transform_indices = @transform_2, window_bounds = array<i64: 1, 96>}, {pipeline_mode = #tpu.pipeline_mode<synchronous>, transform_indices = @transform_3, window_bounds = array<i64: 32, 32>}, {pipeline_mode = #tpu.pipeline_mode<synchronous>, transform_indices = @transform_4, window_bounds = array<i64: 1, 32>}, {pipeline_mode = #tpu.pipeline_mode<synchronous>, transform_indices = @transform_5, window_bounds = array<i64: 1, 32>}, {pipeline_mode = #tpu.pipeline_mode<synchronous>, transform_indices = @transform_6, window_bounds = array<i64: 1, 32>}, {pipeline_mode = #tpu.pipeline_mode<synchronous>, transform_indices = @transform_7, window_bounds = array<i64: 32, 64>}, {pipeline_mode = #tpu.pipeline_mode<synchronous>, transform_indices = @transform_8, window_bounds = array<i64: 1, 64>}, {pipeline_mode = #tpu.pipeline_mode<synchronous>, transform_indices = @transform_9, window_bounds = array<i64: 64, 32>}, {pipeline_mode = #tpu.pipeline_mode<synchronous>, transform_indices = @transform_10, window_bounds = array<i64: 1, 32>}, {pipeline_mode = #tpu.pipeline_mode<synchronous>, transform_indices = @transform_11, window_bounds = array<i64: 1, 32>}, {pipeline_mode = #tpu.pipeline_mode<synchronous>, transform_indices = @transform_12, window_bounds = array<i64: 1, 32>}, {pipeline_mode = #tpu.pipeline_mode<synchronous>, transform_indices = @transform_13, window_bounds = array<i64: 1, 32>}, {pipeline_mode = #tpu.pipeline_mode<synchronous>, transform_indices = @transform_14, window_bounds = array<i64: 1, 32>}, {transform_indices = @transform_15, window_bounds = array<i64: 8, 32>}]} {
    %c0 = arith.constant 0 : index
    %c0_0 = arith.constant 0 : index
    %0 = vector.load %arg1[%c0, %c0_0] : memref<8x32xf32, #tpu.memory_space<vmem>>, vector<8x32xf32>
    %c0_1 = arith.constant 0 : index
    %c0_2 = arith.constant 0 : index
    %1 = vector.load %arg2[%c0_1, %c0_2] : memref<32x96xbf16, #tpu.memory_space<vmem>>, vector<32x96xbf16>
    %c0_3 = arith.constant 0 : index
    %c0_4 = arith.constant 0 : index
    %2 = vector.load %arg3[%c0_3, %c0_4] : memref<1x96xf32, #tpu.memory_space<vmem>>, vector<1x96xf32>
    %c0_5 = arith.constant 0 : index
    %c0_6 = arith.constant 0 : index
    %3 = vector.load %arg4[%c0_5, %c0_6] : memref<32x32xbf16, #tpu.memory_space<vmem>>, vector<32x32xbf16>
    %c0_7 = arith.constant 0 : index
    %c0_8 = arith.constant 0 : index
    %4 = vector.load %arg5[%c0_7, %c0_8] : memref<1x32xf32, #tpu.memory_space<vmem>>, vector<1x32xf32>
    %c0_9 = arith.constant 0 : index
    %c0_10 = arith.constant 0 : index
    %5 = vector.load %arg6[%c0_9, %c0_10] : memref<1x32xf32, #tpu.memory_space<vmem>>, vector<1x32xf32>
    %c0_11 = arith.constant 0 : index
    %c0_12 = arith.constant 0 : index
    %6 = vector.load %arg7[%c0_11, %c0_12] : memref<1x32xf32, #tpu.memory_space<vmem>>, vector<1x32xf32>
    %c0_13 = arith.constant 0 : index
    %c0_14 = arith.constant 0 : index
    %7 = vector.load %arg12[%c0_13, %c0_14] : memref<1x32xf32, #tpu.memory_space<vmem>>, vector<1x32xf32>
    %c0_15 = arith.constant 0 : index
    %c0_16 = arith.constant 0 : index
    %8 = vector.load %arg13[%c0_15, %c0_16] : memref<1x32xf32, #tpu.memory_space<vmem>>, vector<1x32xf32>
    %c0_17 = arith.constant 0 : index
    %c0_18 = arith.constant 0 : index
    %9 = vector.load %arg8[%c0_17, %c0_18] : memref<32x64xbf16, #tpu.memory_space<vmem>>, vector<32x64xbf16>
    %c0_19 = arith.constant 0 : index
    %c0_20 = arith.constant 0 : index
    %10 = vector.load %arg9[%c0_19, %c0_20] : memref<1x64xf32, #tpu.memory_space<vmem>>, vector<1x64xf32>
    %c0_21 = arith.constant 0 : index
    %c0_22 = arith.constant 0 : index
    %11 = vector.load %arg10[%c0_21, %c0_22] : memref<64x32xbf16, #tpu.memory_space<vmem>>, vector<64x32xbf16>
    %c0_23 = arith.constant 0 : index
    %c0_24 = arith.constant 0 : index
    %12 = vector.load %arg11[%c0_23, %c0_24] : memref<1x32xf32, #tpu.memory_space<vmem>>, vector<1x32xf32>
    %c0_i32 = arith.constant 0 : i32
    %13 = arith.truncf %0 : vector<8x32xf32> to vector<8x32xbf16>
    %cst = arith.constant dense<0.000000e+00> : vector<8x96xf32>
    %14 = tpu.matmul %13, %1, %cst {dimension_numbers = #tpu.dot_dimension_numbers<[1], [0], [0], [1], [0, 0, 1, 1], [], []>} : vector<8x32xbf16>, vector<32x96xbf16>, vector<8x96xf32> -> vector<8x96xf32>
    %15 = vector.broadcast %2 : vector<1x96xf32> to vector<8x96xf32>
    %16 = arith.addf %14, %15 : vector<8x96xf32>
    %17 = vector.extract_strided_slice %16 {offsets = [0, 0], sizes = [8, 8], strides = [1, 1]} : vector<8x96xf32> to vector<8x8xf32>
    %18 = vector.shape_cast %17 : vector<8x8xf32> to vector<1x8x8xf32>
    %19 = arith.truncf %18 : vector<1x8x8xf32> to vector<1x8x8xbf16>
    %20 = vector.extract_strided_slice %16 {offsets = [0, 32], sizes = [8, 8], strides = [1, 1]} : vector<8x96xf32> to vector<8x8xf32>
    %21 = vector.shape_cast %20 : vector<8x8xf32> to vector<1x8x8xf32>
    %22 = arith.truncf %21 : vector<1x8x8xf32> to vector<1x8x8xbf16>
    %23 = vector.extract_strided_slice %16 {offsets = [0, 64], sizes = [8, 8], strides = [1, 1]} : vector<8x96xf32> to vector<8x8xf32>
    %24 = vector.shape_cast %23 : vector<8x8xf32> to vector<1x8x8xf32>
    %25 = arith.truncf %24 : vector<1x8x8xf32> to vector<1x8x8xbf16>
    "tpu.trace_start"() <{level = 10 : i32, message = "bqd,bkd->bqk"}> : () -> ()
    %cst_25 = arith.constant dense<0.000000e+00> : vector<1x8x8xf32>
    %26 = tpu.matmul %19, %22, %cst_25 {dimension_numbers = #tpu.dot_dimension_numbers<[2], [2], [1], [1], [0, 0, 0, 1, 1, 1], [0], [0]>} : vector<1x8x8xbf16>, vector<1x8x8xbf16>, vector<1x8x8xf32> -> vector<1x8x8xf32>
    "tpu.trace_stop"() : () -> ()
    %cst_26 = arith.constant dense<0xFF800000> : vector<1x8xf32>
    %27 = vector.multi_reduction <maximumf>, %26, %cst_26 [2] : vector<1x8x8xf32> to vector<1x8xf32>
    %28 = vector.shape_cast %27 : vector<1x8xf32> to vector<1x8x1xf32>
    %29 = vector.broadcast %28 : vector<1x8x1xf32> to vector<1x8x8xf32>
    %30 = arith.subf %26, %29 : vector<1x8x8xf32>
    %31 = math.exp %30 : vector<1x8x8xf32>
    %cst_27 = arith.constant dense<0.000000e+00> : vector<1x8xf32>
    %32 = vector.multi_reduction <add>, %31, %cst_27 [2] : vector<1x8x8xf32> to vector<1x8xf32>
    %33 = vector.shape_cast %32 : vector<1x8xf32> to vector<1x8x1xf32>
    %34 = tpu.reciprocal %33 {approx = true} : vector<1x8x1xf32> -> vector<1x8x1xf32>
    %35 = vector.broadcast %34 : vector<1x8x1xf32> to vector<1x8x8xf32>
    %36 = arith.mulf %31, %35 : vector<1x8x8xf32>
    %37 = arith.truncf %36 : vector<1x8x8xf32> to vector<1x8x8xbf16>
    "tpu.trace_start"() <{level = 10 : i32, message = "bqk,bkd->bqd"}> : () -> ()
    %cst_28 = arith.constant dense<0.000000e+00> : vector<1x8x8xf32>
    %38 = tpu.matmul %37, %25, %cst_28 {dimension_numbers = #tpu.dot_dimension_numbers<[2], [1], [1], [2], [0, 0, 0, 1, 1, 2], [0], [0]>} : vector<1x8x8xbf16>, vector<1x8x8xbf16>, vector<1x8x8xf32> -> vector<1x8x8xf32>
    "tpu.trace_stop"() : () -> ()
    %39 = vector.shape_cast %38 : vector<1x8x8xf32> to vector<8x8xf32>
    %40 = vector.extract_strided_slice %16 {offsets = [0, 8], sizes = [8, 8], strides = [1, 1]} : vector<8x96xf32> to vector<8x8xf32>
    %41 = vector.shape_cast %40 : vector<8x8xf32> to vector<1x8x8xf32>
    %42 = arith.truncf %41 : vector<1x8x8xf32> to vector<1x8x8xbf16>
    %43 = vector.extract_strided_slice %16 {offsets = [0, 40], sizes = [8, 8], strides = [1, 1]} : vector<8x96xf32> to vector<8x8xf32>
    %44 = vector.shape_cast %43 : vector<8x8xf32> to vector<1x8x8xf32>
    %45 = arith.truncf %44 : vector<1x8x8xf32> to vector<1x8x8xbf16>
    %46 = vector.extract_strided_slice %16 {offsets = [0, 72], sizes = [8, 8], strides = [1, 1]} : vector<8x96xf32> to vector<8x8xf32>
    %47 = vector.shape_cast %46 : vector<8x8xf32> to vector<1x8x8xf32>
    %48 = arith.truncf %47 : vector<1x8x8xf32> to vector<1x8x8xbf16>
    "tpu.trace_start"() <{level = 10 : i32, message = "bqd,bkd->bqk"}> : () -> ()
    %cst_29 = arith.constant dense<0.000000e+00> : vector<1x8x8xf32>
    %49 = tpu.matmul %42, %45, %cst_29 {dimension_numbers = #tpu.dot_dimension_numbers<[2], [2], [1], [1], [0, 0, 0, 1, 1, 1], [0], [0]>} : vector<1x8x8xbf16>, vector<1x8x8xbf16>, vector<1x8x8xf32> -> vector<1x8x8xf32>
    "tpu.trace_stop"() : () -> ()
    %cst_30 = arith.constant dense<0xFF800000> : vector<1x8xf32>
    %50 = vector.multi_reduction <maximumf>, %49, %cst_30 [2] : vector<1x8x8xf32> to vector<1x8xf32>
    %51 = vector.shape_cast %50 : vector<1x8xf32> to vector<1x8x1xf32>
    %52 = vector.broadcast %51 : vector<1x8x1xf32> to vector<1x8x8xf32>
    %53 = arith.subf %49, %52 : vector<1x8x8xf32>
    %54 = math.exp %53 : vector<1x8x8xf32>
    %cst_31 = arith.constant dense<0.000000e+00> : vector<1x8xf32>
    %55 = vector.multi_reduction <add>, %54, %cst_31 [2] : vector<1x8x8xf32> to vector<1x8xf32>
    %56 = vector.shape_cast %55 : vector<1x8xf32> to vector<1x8x1xf32>
    %57 = tpu.reciprocal %56 {approx = true} : vector<1x8x1xf32> -> vector<1x8x1xf32>
    %58 = vector.broadcast %57 : vector<1x8x1xf32> to vector<1x8x8xf32>
    %59 = arith.mulf %54, %58 : vector<1x8x8xf32>
    %60 = arith.truncf %59 : vector<1x8x8xf32> to vector<1x8x8xbf16>
    "tpu.trace_start"() <{level = 10 : i32, message = "bqk,bkd->bqd"}> : () -> ()
    %cst_32 = arith.constant dense<0.000000e+00> : vector<1x8x8xf32>
    %61 = tpu.matmul %60, %48, %cst_32 {dimension_numbers = #tpu.dot_dimension_numbers<[2], [1], [1], [2], [0, 0, 0, 1, 1, 2], [0], [0]>} : vector<1x8x8xbf16>, vector<1x8x8xbf16>, vector<1x8x8xf32> -> vector<1x8x8xf32>
    "tpu.trace_stop"() : () -> ()
    %62 = vector.shape_cast %61 : vector<1x8x8xf32> to vector<8x8xf32>
    %63 = vector.extract_strided_slice %16 {offsets = [0, 16], sizes = [8, 8], strides = [1, 1]} : vector<8x96xf32> to vector<8x8xf32>
    %64 = vector.shape_cast %63 : vector<8x8xf32> to vector<1x8x8xf32>
    %65 = arith.truncf %64 : vector<1x8x8xf32> to vector<1x8x8xbf16>
    %66 = vector.extract_strided_slice %16 {offsets = [0, 48], sizes = [8, 8], strides = [1, 1]} : vector<8x96xf32> to vector<8x8xf32>
    %67 = vector.shape_cast %66 : vector<8x8xf32> to vector<1x8x8xf32>
    %68 = arith.truncf %67 : vector<1x8x8xf32> to vector<1x8x8xbf16>
    %69 = vector.extract_strided_slice %16 {offsets = [0, 80], sizes = [8, 8], strides = [1, 1]} : vector<8x96xf32> to vector<8x8xf32>
    %70 = vector.shape_cast %69 : vector<8x8xf32> to vector<1x8x8xf32>
    %71 = arith.truncf %70 : vector<1x8x8xf32> to vector<1x8x8xbf16>
    "tpu.trace_start"() <{level = 10 : i32, message = "bqd,bkd->bqk"}> : () -> ()
    %cst_33 = arith.constant dense<0.000000e+00> : vector<1x8x8xf32>
    %72 = tpu.matmul %65, %68, %cst_33 {dimension_numbers = #tpu.dot_dimension_numbers<[2], [2], [1], [1], [0, 0, 0, 1, 1, 1], [0], [0]>} : vector<1x8x8xbf16>, vector<1x8x8xbf16>, vector<1x8x8xf32> -> vector<1x8x8xf32>
    "tpu.trace_stop"() : () -> ()
    %cst_34 = arith.constant dense<0xFF800000> : vector<1x8xf32>
    %73 = vector.multi_reduction <maximumf>, %72, %cst_34 [2] : vector<1x8x8xf32> to vector<1x8xf32>
    %74 = vector.shape_cast %73 : vector<1x8xf32> to vector<1x8x1xf32>
    %75 = vector.broadcast %74 : vector<1x8x1xf32> to vector<1x8x8xf32>
    %76 = arith.subf %72, %75 : vector<1x8x8xf32>
    %77 = math.exp %76 : vector<1x8x8xf32>
    %cst_35 = arith.constant dense<0.000000e+00> : vector<1x8xf32>
    %78 = vector.multi_reduction <add>, %77, %cst_35 [2] : vector<1x8x8xf32> to vector<1x8xf32>
    %79 = vector.shape_cast %78 : vector<1x8xf32> to vector<1x8x1xf32>
    %80 = tpu.reciprocal %79 {approx = true} : vector<1x8x1xf32> -> vector<1x8x1xf32>
    %81 = vector.broadcast %80 : vector<1x8x1xf32> to vector<1x8x8xf32>
    %82 = arith.mulf %77, %81 : vector<1x8x8xf32>
    %83 = arith.truncf %82 : vector<1x8x8xf32> to vector<1x8x8xbf16>
    "tpu.trace_start"() <{level = 10 : i32, message = "bqk,bkd->bqd"}> : () -> ()
    %cst_36 = arith.constant dense<0.000000e+00> : vector<1x8x8xf32>
    %84 = tpu.matmul %83, %71, %cst_36 {dimension_numbers = #tpu.dot_dimension_numbers<[2], [1], [1], [2], [0, 0, 0, 1, 1, 2], [0], [0]>} : vector<1x8x8xbf16>, vector<1x8x8xbf16>, vector<1x8x8xf32> -> vector<1x8x8xf32>
    "tpu.trace_stop"() : () -> ()
    %85 = vector.shape_cast %84 : vector<1x8x8xf32> to vector<8x8xf32>
    %86 = vector.extract_strided_slice %16 {offsets = [0, 24], sizes = [8, 8], strides = [1, 1]} : vector<8x96xf32> to vector<8x8xf32>
    %87 = vector.shape_cast %86 : vector<8x8xf32> to vector<1x8x8xf32>
    %88 = arith.truncf %87 : vector<1x8x8xf32> to vector<1x8x8xbf16>
    %89 = vector.extract_strided_slice %16 {offsets = [0, 56], sizes = [8, 8], strides = [1, 1]} : vector<8x96xf32> to vector<8x8xf32>
    %90 = vector.shape_cast %89 : vector<8x8xf32> to vector<1x8x8xf32>
    %91 = arith.truncf %90 : vector<1x8x8xf32> to vector<1x8x8xbf16>
    %92 = vector.extract_strided_slice %16 {offsets = [0, 88], sizes = [8, 8], strides = [1, 1]} : vector<8x96xf32> to vector<8x8xf32>
    %93 = vector.shape_cast %92 : vector<8x8xf32> to vector<1x8x8xf32>
    %94 = arith.truncf %93 : vector<1x8x8xf32> to vector<1x8x8xbf16>
    "tpu.trace_start"() <{level = 10 : i32, message = "bqd,bkd->bqk"}> : () -> ()
    %cst_37 = arith.constant dense<0.000000e+00> : vector<1x8x8xf32>
    %95 = tpu.matmul %88, %91, %cst_37 {dimension_numbers = #tpu.dot_dimension_numbers<[2], [2], [1], [1], [0, 0, 0, 1, 1, 1], [0], [0]>} : vector<1x8x8xbf16>, vector<1x8x8xbf16>, vector<1x8x8xf32> -> vector<1x8x8xf32>
    "tpu.trace_stop"() : () -> ()
    %cst_38 = arith.constant dense<0xFF800000> : vector<1x8xf32>
    %96 = vector.multi_reduction <maximumf>, %95, %cst_38 [2] : vector<1x8x8xf32> to vector<1x8xf32>
    %97 = vector.shape_cast %96 : vector<1x8xf32> to vector<1x8x1xf32>
    %98 = vector.broadcast %97 : vector<1x8x1xf32> to vector<1x8x8xf32>
    %99 = arith.subf %95, %98 : vector<1x8x8xf32>
    %100 = math.exp %99 : vector<1x8x8xf32>
    %cst_39 = arith.constant dense<0.000000e+00> : vector<1x8xf32>
    %101 = vector.multi_reduction <add>, %100, %cst_39 [2] : vector<1x8x8xf32> to vector<1x8xf32>
    %102 = vector.shape_cast %101 : vector<1x8xf32> to vector<1x8x1xf32>
    %103 = tpu.reciprocal %102 {approx = true} : vector<1x8x1xf32> -> vector<1x8x1xf32>
    %104 = vector.broadcast %103 : vector<1x8x1xf32> to vector<1x8x8xf32>
    %105 = arith.mulf %100, %104 : vector<1x8x8xf32>
    %106 = arith.truncf %105 : vector<1x8x8xf32> to vector<1x8x8xbf16>
    "tpu.trace_start"() <{level = 10 : i32, message = "bqk,bkd->bqd"}> : () -> ()
    %cst_40 = arith.constant dense<0.000000e+00> : vector<1x8x8xf32>
    %107 = tpu.matmul %106, %94, %cst_40 {dimension_numbers = #tpu.dot_dimension_numbers<[2], [1], [1], [2], [0, 0, 0, 1, 1, 2], [0], [0]>} : vector<1x8x8xbf16>, vector<1x8x8xbf16>, vector<1x8x8xf32> -> vector<1x8x8xf32>
    "tpu.trace_stop"() : () -> ()
    %108 = vector.shape_cast %107 : vector<1x8x8xf32> to vector<8x8xf32>
    %109 = tpu.concatenate %39, %62, %85, %108 in 1 : vector<8x8xf32>, vector<8x8xf32>, vector<8x8xf32>, vector<8x8xf32> -> vector<8x32xf32>
    %110 = arith.truncf %109 : vector<8x32xf32> to vector<8x32xbf16>
    %cst_41 = arith.constant dense<0.000000e+00> : vector<8x32xf32>
    %111 = tpu.matmul %110, %3, %cst_41 {dimension_numbers = #tpu.dot_dimension_numbers<[1], [0], [0], [1], [0, 0, 1, 1], [], []>} : vector<8x32xbf16>, vector<32x32xbf16>, vector<8x32xf32> -> vector<8x32xf32>
    %112 = vector.broadcast %4 : vector<1x32xf32> to vector<8x32xf32>
    %113 = arith.addf %111, %112 : vector<8x32xf32>
    %114 = arith.addf %0, %113 : vector<8x32xf32>
    %cst_42 = arith.constant dense<0.000000e+00> : vector<8xf32>
    %115 = vector.multi_reduction <add>, %114, %cst_42 [1] : vector<8x32xf32> to vector<8xf32>
    %116 = vector.shape_cast %115 : vector<8xf32> to vector<8x1xf32>
    %cst_43 = arith.constant 3.200000e+01 : f32
    %117 = vector.broadcast %cst_43 : f32 to vector<8x1xf32>
    %118 = arith.divf %116, %117 : vector<8x1xf32>
    %119 = vector.broadcast %118 : vector<8x1xf32> to vector<8x32xf32>
    %120 = arith.subf %114, %119 : vector<8x32xf32>
    %121 = arith.mulf %120, %120 : vector<8x32xf32>
    %cst_44 = arith.constant dense<0.000000e+00> : vector<8xf32>
    %122 = vector.multi_reduction <add>, %121, %cst_44 [1] : vector<8x32xf32> to vector<8xf32>
    %123 = vector.shape_cast %122 : vector<8xf32> to vector<8x1xf32>
    %cst_45 = arith.constant 3.200000e+01 : f32
    %124 = vector.broadcast %cst_45 : f32 to vector<8x1xf32>
    %125 = arith.divf %123, %124 : vector<8x1xf32>
    %126 = vector.broadcast %118 : vector<8x1xf32> to vector<8x32xf32>
    %127 = arith.subf %114, %126 : vector<8x32xf32>
    %cst_46 = arith.constant 9.99999974E-6 : f32
    %128 = vector.broadcast %cst_46 : f32 to vector<8x1xf32>
    %129 = arith.addf %125, %128 : vector<8x1xf32>
    %130 = math.rsqrt %129 : vector<8x1xf32>
    %131 = vector.broadcast %130 : vector<8x1xf32> to vector<8x32xf32>
    %132 = arith.mulf %127, %131 : vector<8x32xf32>
    %133 = vector.broadcast %5 : vector<1x32xf32> to vector<8x32xf32>
    %134 = arith.mulf %132, %133 : vector<8x32xf32>
    %135 = vector.broadcast %6 : vector<1x32xf32> to vector<8x32xf32>
    %136 = arith.addf %134, %135 : vector<8x32xf32>
    %137 = arith.truncf %136 : vector<8x32xf32> to vector<8x32xbf16>
    %cst_47 = arith.constant dense<0.000000e+00> : vector<8x64xf32>
    %138 = tpu.matmul %137, %9, %cst_47 {dimension_numbers = #tpu.dot_dimension_numbers<[1], [0], [0], [1], [0, 0, 1, 1], [], []>} : vector<8x32xbf16>, vector<32x64xbf16>, vector<8x64xf32> -> vector<8x64xf32>
    %139 = vector.broadcast %10 : vector<1x64xf32> to vector<8x64xf32>
    %140 = arith.addf %138, %139 : vector<8x64xf32>
    %cst_48 = arith.constant 0.000000e+00 : f32
    %141 = vector.broadcast %cst_48 : f32 to vector<8x64xf32>
    %142 = arith.maximumf %140, %141 : vector<8x64xf32>
    %143 = arith.truncf %142 : vector<8x64xf32> to vector<8x64xbf16>
    %cst_49 = arith.constant dense<0.000000e+00> : vector<8x32xf32>
    %144 = tpu.matmul %143, %11, %cst_49 {dimension_numbers = #tpu.dot_dimension_numbers<[1], [0], [0], [1], [0, 0, 1, 1], [], []>} : vector<8x64xbf16>, vector<64x32xbf16>, vector<8x32xf32> -> vector<8x32xf32>
    %145 = vector.broadcast %12 : vector<1x32xf32> to vector<8x32xf32>
    %146 = arith.addf %144, %145 : vector<8x32xf32>
    %147 = arith.addf %136, %146 : vector<8x32xf32>
    %cst_50 = arith.constant dense<0.000000e+00> : vector<8xf32>
    %148 = vector.multi_reduction <add>, %147, %cst_50 [1] : vector<8x32xf32> to vector<8xf32>
    %149 = vector.shape_cast %148 : vector<8xf32> to vector<8x1xf32>
    %cst_51 = arith.constant 3.200000e+01 : f32
    %150 = vector.broadcast %cst_51 : f32 to vector<8x1xf32>
    %151 = arith.divf %149, %150 : vector<8x1xf32>
    %152 = vector.broadcast %151 : vector<8x1xf32> to vector<8x32xf32>
    %153 = arith.subf %147, %152 : vector<8x32xf32>
    %154 = arith.mulf %153, %153 : vector<8x32xf32>
    %cst_52 = arith.constant dense<0.000000e+00> : vector<8xf32>
    %155 = vector.multi_reduction <add>, %154, %cst_52 [1] : vector<8x32xf32> to vector<8xf32>
    %156 = vector.shape_cast %155 : vector<8xf32> to vector<8x1xf32>
    %cst_53 = arith.constant 3.200000e+01 : f32
    %157 = vector.broadcast %cst_53 : f32 to vector<8x1xf32>
    %158 = arith.divf %156, %157 : vector<8x1xf32>
    %159 = vector.broadcast %151 : vector<8x1xf32> to vector<8x32xf32>
    %160 = arith.subf %147, %159 : vector<8x32xf32>
    %cst_54 = arith.constant 9.99999974E-6 : f32
    %161 = vector.broadcast %cst_54 : f32 to vector<8x1xf32>
    %162 = arith.addf %158, %161 : vector<8x1xf32>
    %163 = math.rsqrt %162 : vector<8x1xf32>
    %164 = vector.broadcast %163 : vector<8x1xf32> to vector<8x32xf32>
    %165 = arith.mulf %160, %164 : vector<8x32xf32>
    %166 = vector.broadcast %7 : vector<1x32xf32> to vector<8x32xf32>
    %167 = arith.mulf %165, %166 : vector<8x32xf32>
    %168 = vector.broadcast %8 : vector<1x32xf32> to vector<8x32xf32>
    %169 = arith.addf %167, %168 : vector<8x32xf32>
    %c1_i32 = arith.constant 1 : i32
    %170 = arith.truncf %169 : vector<8x32xf32> to vector<8x32xbf16>
    %cst_55 = arith.constant dense<0.000000e+00> : vector<8x96xf32>
    %171 = tpu.matmul %170, %1, %cst_55 {dimension_numbers = #tpu.dot_dimension_numbers<[1], [0], [0], [1], [0, 0, 1, 1], [], []>} : vector<8x32xbf16>, vector<32x96xbf16>, vector<8x96xf32> -> vector<8x96xf32>
    %172 = vector.broadcast %2 : vector<1x96xf32> to vector<8x96xf32>
    %173 = arith.addf %171, %172 : vector<8x96xf32>
    %174 = vector.extract_strided_slice %173 {offsets = [0, 0], sizes = [8, 8], strides = [1, 1]} : vector<8x96xf32> to vector<8x8xf32>
    %175 = vector.shape_cast %174 : vector<8x8xf32> to vector<1x8x8xf32>
    %176 = arith.truncf %175 : vector<1x8x8xf32> to vector<1x8x8xbf16>
    %177 = vector.extract_strided_slice %173 {offsets = [0, 32], sizes = [8, 8], strides = [1, 1]} : vector<8x96xf32> to vector<8x8xf32>
    %178 = vector.shape_cast %177 : vector<8x8xf32> to vector<1x8x8xf32>
    %179 = arith.truncf %178 : vector<1x8x8xf32> to vector<1x8x8xbf16>
    %180 = vector.extract_strided_slice %173 {offsets = [0, 64], sizes = [8, 8], strides = [1, 1]} : vector<8x96xf32> to vector<8x8xf32>
    %181 = vector.shape_cast %180 : vector<8x8xf32> to vector<1x8x8xf32>
    %182 = arith.truncf %181 : vector<1x8x8xf32> to vector<1x8x8xbf16>
    "tpu.trace_start"() <{level = 10 : i32, message = "bqd,bkd->bqk"}> : () -> ()
    %cst_56 = arith.constant dense<0.000000e+00> : vector<1x8x8xf32>
    %183 = tpu.matmul %176, %179, %cst_56 {dimension_numbers = #tpu.dot_dimension_numbers<[2], [2], [1], [1], [0, 0, 0, 1, 1, 1], [0], [0]>} : vector<1x8x8xbf16>, vector<1x8x8xbf16>, vector<1x8x8xf32> -> vector<1x8x8xf32>
    "tpu.trace_stop"() : () -> ()
    %cst_57 = arith.constant dense<0xFF800000> : vector<1x8xf32>
    %184 = vector.multi_reduction <maximumf>, %183, %cst_57 [2] : vector<1x8x8xf32> to vector<1x8xf32>
    %185 = vector.shape_cast %184 : vector<1x8xf32> to vector<1x8x1xf32>
    %186 = vector.broadcast %185 : vector<1x8x1xf32> to vector<1x8x8xf32>
    %187 = arith.subf %183, %186 : vector<1x8x8xf32>
    %188 = math.exp %187 : vector<1x8x8xf32>
    %cst_58 = arith.constant dense<0.000000e+00> : vector<1x8xf32>
    %189 = vector.multi_reduction <add>, %188, %cst_58 [2] : vector<1x8x8xf32> to vector<1x8xf32>
    %190 = vector.shape_cast %189 : vector<1x8xf32> to vector<1x8x1xf32>
    %191 = tpu.reciprocal %190 {approx = true} : vector<1x8x1xf32> -> vector<1x8x1xf32>
    %192 = vector.broadcast %191 : vector<1x8x1xf32> to vector<1x8x8xf32>
    %193 = arith.mulf %188, %192 : vector<1x8x8xf32>
    %194 = arith.truncf %193 : vector<1x8x8xf32> to vector<1x8x8xbf16>
    "tpu.trace_start"() <{level = 10 : i32, message = "bqk,bkd->bqd"}> : () -> ()
    %cst_59 = arith.constant dense<0.000000e+00> : vector<1x8x8xf32>
    %195 = tpu.matmul %194, %182, %cst_59 {dimension_numbers = #tpu.dot_dimension_numbers<[2], [1], [1], [2], [0, 0, 0, 1, 1, 2], [0], [0]>} : vector<1x8x8xbf16>, vector<1x8x8xbf16>, vector<1x8x8xf32> -> vector<1x8x8xf32>
    "tpu.trace_stop"() : () -> ()
    %196 = vector.shape_cast %195 : vector<1x8x8xf32> to vector<8x8xf32>
    %197 = vector.extract_strided_slice %173 {offsets = [0, 8], sizes = [8, 8], strides = [1, 1]} : vector<8x96xf32> to vector<8x8xf32>
    %198 = vector.shape_cast %197 : vector<8x8xf32> to vector<1x8x8xf32>
    %199 = arith.truncf %198 : vector<1x8x8xf32> to vector<1x8x8xbf16>
    %200 = vector.extract_strided_slice %173 {offsets = [0, 40], sizes = [8, 8], strides = [1, 1]} : vector<8x96xf32> to vector<8x8xf32>
    %201 = vector.shape_cast %200 : vector<8x8xf32> to vector<1x8x8xf32>
    %202 = arith.truncf %201 : vector<1x8x8xf32> to vector<1x8x8xbf16>
    %203 = vector.extract_strided_slice %173 {offsets = [0, 72], sizes = [8, 8], strides = [1, 1]} : vector<8x96xf32> to vector<8x8xf32>
    %204 = vector.shape_cast %203 : vector<8x8xf32> to vector<1x8x8xf32>
    %205 = arith.truncf %204 : vector<1x8x8xf32> to vector<1x8x8xbf16>
    "tpu.trace_start"() <{level = 10 : i32, message = "bqd,bkd->bqk"}> : () -> ()
    %cst_60 = arith.constant dense<0.000000e+00> : vector<1x8x8xf32>
    %206 = tpu.matmul %199, %202, %cst_60 {dimension_numbers = #tpu.dot_dimension_numbers<[2], [2], [1], [1], [0, 0, 0, 1, 1, 1], [0], [0]>} : vector<1x8x8xbf16>, vector<1x8x8xbf16>, vector<1x8x8xf32> -> vector<1x8x8xf32>
    "tpu.trace_stop"() : () -> ()
    %cst_61 = arith.constant dense<0xFF800000> : vector<1x8xf32>
    %207 = vector.multi_reduction <maximumf>, %206, %cst_61 [2] : vector<1x8x8xf32> to vector<1x8xf32>
    %208 = vector.shape_cast %207 : vector<1x8xf32> to vector<1x8x1xf32>
    %209 = vector.broadcast %208 : vector<1x8x1xf32> to vector<1x8x8xf32>
    %210 = arith.subf %206, %209 : vector<1x8x8xf32>
    %211 = math.exp %210 : vector<1x8x8xf32>
    %cst_62 = arith.constant dense<0.000000e+00> : vector<1x8xf32>
    %212 = vector.multi_reduction <add>, %211, %cst_62 [2] : vector<1x8x8xf32> to vector<1x8xf32>
    %213 = vector.shape_cast %212 : vector<1x8xf32> to vector<1x8x1xf32>
    %214 = tpu.reciprocal %213 {approx = true} : vector<1x8x1xf32> -> vector<1x8x1xf32>
    %215 = vector.broadcast %214 : vector<1x8x1xf32> to vector<1x8x8xf32>
    %216 = arith.mulf %211, %215 : vector<1x8x8xf32>
    %217 = arith.truncf %216 : vector<1x8x8xf32> to vector<1x8x8xbf16>
    "tpu.trace_start"() <{level = 10 : i32, message = "bqk,bkd->bqd"}> : () -> ()
    %cst_63 = arith.constant dense<0.000000e+00> : vector<1x8x8xf32>
    %218 = tpu.matmul %217, %205, %cst_63 {dimension_numbers = #tpu.dot_dimension_numbers<[2], [1], [1], [2], [0, 0, 0, 1, 1, 2], [0], [0]>} : vector<1x8x8xbf16>, vector<1x8x8xbf16>, vector<1x8x8xf32> -> vector<1x8x8xf32>
    "tpu.trace_stop"() : () -> ()
    %219 = vector.shape_cast %218 : vector<1x8x8xf32> to vector<8x8xf32>
    %220 = vector.extract_strided_slice %173 {offsets = [0, 16], sizes = [8, 8], strides = [1, 1]} : vector<8x96xf32> to vector<8x8xf32>
    %221 = vector.shape_cast %220 : vector<8x8xf32> to vector<1x8x8xf32>
    %222 = arith.truncf %221 : vector<1x8x8xf32> to vector<1x8x8xbf16>
    %223 = vector.extract_strided_slice %173 {offsets = [0, 48], sizes = [8, 8], strides = [1, 1]} : vector<8x96xf32> to vector<8x8xf32>
    %224 = vector.shape_cast %223 : vector<8x8xf32> to vector<1x8x8xf32>
    %225 = arith.truncf %224 : vector<1x8x8xf32> to vector<1x8x8xbf16>
    %226 = vector.extract_strided_slice %173 {offsets = [0, 80], sizes = [8, 8], strides = [1, 1]} : vector<8x96xf32> to vector<8x8xf32>
    %227 = vector.shape_cast %226 : vector<8x8xf32> to vector<1x8x8xf32>
    %228 = arith.truncf %227 : vector<1x8x8xf32> to vector<1x8x8xbf16>
    "tpu.trace_start"() <{level = 10 : i32, message = "bqd,bkd->bqk"}> : () -> ()
    %cst_64 = arith.constant dense<0.000000e+00> : vector<1x8x8xf32>
    %229 = tpu.matmul %222, %225, %cst_64 {dimension_numbers = #tpu.dot_dimension_numbers<[2], [2], [1], [1], [0, 0, 0, 1, 1, 1], [0], [0]>} : vector<1x8x8xbf16>, vector<1x8x8xbf16>, vector<1x8x8xf32> -> vector<1x8x8xf32>
    "tpu.trace_stop"() : () -> ()
    %cst_65 = arith.constant dense<0xFF800000> : vector<1x8xf32>
    %230 = vector.multi_reduction <maximumf>, %229, %cst_65 [2] : vector<1x8x8xf32> to vector<1x8xf32>
    %231 = vector.shape_cast %230 : vector<1x8xf32> to vector<1x8x1xf32>
    %232 = vector.broadcast %231 : vector<1x8x1xf32> to vector<1x8x8xf32>
    %233 = arith.subf %229, %232 : vector<1x8x8xf32>
    %234 = math.exp %233 : vector<1x8x8xf32>
    %cst_66 = arith.constant dense<0.000000e+00> : vector<1x8xf32>
    %235 = vector.multi_reduction <add>, %234, %cst_66 [2] : vector<1x8x8xf32> to vector<1x8xf32>
    %236 = vector.shape_cast %235 : vector<1x8xf32> to vector<1x8x1xf32>
    %237 = tpu.reciprocal %236 {approx = true} : vector<1x8x1xf32> -> vector<1x8x1xf32>
    %238 = vector.broadcast %237 : vector<1x8x1xf32> to vector<1x8x8xf32>
    %239 = arith.mulf %234, %238 : vector<1x8x8xf32>
    %240 = arith.truncf %239 : vector<1x8x8xf32> to vector<1x8x8xbf16>
    "tpu.trace_start"() <{level = 10 : i32, message = "bqk,bkd->bqd"}> : () -> ()
    %cst_67 = arith.constant dense<0.000000e+00> : vector<1x8x8xf32>
    %241 = tpu.matmul %240, %228, %cst_67 {dimension_numbers = #tpu.dot_dimension_numbers<[2], [1], [1], [2], [0, 0, 0, 1, 1, 2], [0], [0]>} : vector<1x8x8xbf16>, vector<1x8x8xbf16>, vector<1x8x8xf32> -> vector<1x8x8xf32>
    "tpu.trace_stop"() : () -> ()
    %242 = vector.shape_cast %241 : vector<1x8x8xf32> to vector<8x8xf32>
    %243 = vector.extract_strided_slice %173 {offsets = [0, 24], sizes = [8, 8], strides = [1, 1]} : vector<8x96xf32> to vector<8x8xf32>
    %244 = vector.shape_cast %243 : vector<8x8xf32> to vector<1x8x8xf32>
    %245 = arith.truncf %244 : vector<1x8x8xf32> to vector<1x8x8xbf16>
    %246 = vector.extract_strided_slice %173 {offsets = [0, 56], sizes = [8, 8], strides = [1, 1]} : vector<8x96xf32> to vector<8x8xf32>
    %247 = vector.shape_cast %246 : vector<8x8xf32> to vector<1x8x8xf32>
    %248 = arith.truncf %247 : vector<1x8x8xf32> to vector<1x8x8xbf16>
    %249 = vector.extract_strided_slice %173 {offsets = [0, 88], sizes = [8, 8], strides = [1, 1]} : vector<8x96xf32> to vector<8x8xf32>
    %250 = vector.shape_cast %249 : vector<8x8xf32> to vector<1x8x8xf32>
    %251 = arith.truncf %250 : vector<1x8x8xf32> to vector<1x8x8xbf16>
    "tpu.trace_start"() <{level = 10 : i32, message = "bqd,bkd->bqk"}> : () -> ()
    %cst_68 = arith.constant dense<0.000000e+00> : vector<1x8x8xf32>
    %252 = tpu.matmul %245, %248, %cst_68 {dimension_numbers = #tpu.dot_dimension_numbers<[2], [2], [1], [1], [0, 0, 0, 1, 1, 1], [0], [0]>} : vector<1x8x8xbf16>, vector<1x8x8xbf16>, vector<1x8x8xf32> -> vector<1x8x8xf32>
    "tpu.trace_stop"() : () -> ()
    %cst_69 = arith.constant dense<0xFF800000> : vector<1x8xf32>
    %253 = vector.multi_reduction <maximumf>, %252, %cst_69 [2] : vector<1x8x8xf32> to vector<1x8xf32>
    %254 = vector.shape_cast %253 : vector<1x8xf32> to vector<1x8x1xf32>
    %255 = vector.broadcast %254 : vector<1x8x1xf32> to vector<1x8x8xf32>
    %256 = arith.subf %252, %255 : vector<1x8x8xf32>
    %257 = math.exp %256 : vector<1x8x8xf32>
    %cst_70 = arith.constant dense<0.000000e+00> : vector<1x8xf32>
    %258 = vector.multi_reduction <add>, %257, %cst_70 [2] : vector<1x8x8xf32> to vector<1x8xf32>
    %259 = vector.shape_cast %258 : vector<1x8xf32> to vector<1x8x1xf32>
    %260 = tpu.reciprocal %259 {approx = true} : vector<1x8x1xf32> -> vector<1x8x1xf32>
    %261 = vector.broadcast %260 : vector<1x8x1xf32> to vector<1x8x8xf32>
    %262 = arith.mulf %257, %261 : vector<1x8x8xf32>
    %263 = arith.truncf %262 : vector<1x8x8xf32> to vector<1x8x8xbf16>
    "tpu.trace_start"() <{level = 10 : i32, message = "bqk,bkd->bqd"}> : () -> ()
    %cst_71 = arith.constant dense<0.000000e+00> : vector<1x8x8xf32>
    %264 = tpu.matmul %263, %251, %cst_71 {dimension_numbers = #tpu.dot_dimension_numbers<[2], [1], [1], [2], [0, 0, 0, 1, 1, 2], [0], [0]>} : vector<1x8x8xbf16>, vector<1x8x8xbf16>, vector<1x8x8xf32> -> vector<1x8x8xf32>
    "tpu.trace_stop"() : () -> ()
    %265 = vector.shape_cast %264 : vector<1x8x8xf32> to vector<8x8xf32>
    %266 = tpu.concatenate %196, %219, %242, %265 in 1 : vector<8x8xf32>, vector<8x8xf32>, vector<8x8xf32>, vector<8x8xf32> -> vector<8x32xf32>
    %267 = arith.truncf %266 : vector<8x32xf32> to vector<8x32xbf16>
    %cst_72 = arith.constant dense<0.000000e+00> : vector<8x32xf32>
    %268 = tpu.matmul %267, %3, %cst_72 {dimension_numbers = #tpu.dot_dimension_numbers<[1], [0], [0], [1], [0, 0, 1, 1], [], []>} : vector<8x32xbf16>, vector<32x32xbf16>, vector<8x32xf32> -> vector<8x32xf32>
    %269 = vector.broadcast %4 : vector<1x32xf32> to vector<8x32xf32>
    %270 = arith.addf %268, %269 : vector<8x32xf32>
    %271 = arith.addf %169, %270 : vector<8x32xf32>
    %cst_73 = arith.constant dense<0.000000e+00> : vector<8xf32>
    %272 = vector.multi_reduction <add>, %271, %cst_73 [1] : vector<8x32xf32> to vector<8xf32>
    %273 = vector.shape_cast %272 : vector<8xf32> to vector<8x1xf32>
    %cst_74 = arith.constant 3.200000e+01 : f32
    %274 = vector.broadcast %cst_74 : f32 to vector<8x1xf32>
    %275 = arith.divf %273, %274 : vector<8x1xf32>
    %276 = vector.broadcast %275 : vector<8x1xf32> to vector<8x32xf32>
    %277 = arith.subf %271, %276 : vector<8x32xf32>
    %278 = arith.mulf %277, %277 : vector<8x32xf32>
    %cst_75 = arith.constant dense<0.000000e+00> : vector<8xf32>
    %279 = vector.multi_reduction <add>, %278, %cst_75 [1] : vector<8x32xf32> to vector<8xf32>
    %280 = vector.shape_cast %279 : vector<8xf32> to vector<8x1xf32>
    %cst_76 = arith.constant 3.200000e+01 : f32
    %281 = vector.broadcast %cst_76 : f32 to vector<8x1xf32>
    %282 = arith.divf %280, %281 : vector<8x1xf32>
    %283 = vector.broadcast %275 : vector<8x1xf32> to vector<8x32xf32>
    %284 = arith.subf %271, %283 : vector<8x32xf32>
    %cst_77 = arith.constant 9.99999974E-6 : f32
    %285 = vector.broadcast %cst_77 : f32 to vector<8x1xf32>
    %286 = arith.addf %282, %285 : vector<8x1xf32>
    %287 = math.rsqrt %286 : vector<8x1xf32>
    %288 = vector.broadcast %287 : vector<8x1xf32> to vector<8x32xf32>
    %289 = arith.mulf %284, %288 : vector<8x32xf32>
    %290 = vector.broadcast %5 : vector<1x32xf32> to vector<8x32xf32>
    %291 = arith.mulf %289, %290 : vector<8x32xf32>
    %292 = vector.broadcast %6 : vector<1x32xf32> to vector<8x32xf32>
    %293 = arith.addf %291, %292 : vector<8x32xf32>
    %294 = arith.truncf %293 : vector<8x32xf32> to vector<8x32xbf16>
    %cst_78 = arith.constant dense<0.000000e+00> : vector<8x64xf32>
    %295 = tpu.matmul %294, %9, %cst_78 {dimension_numbers = #tpu.dot_dimension_numbers<[1], [0], [0], [1], [0, 0, 1, 1], [], []>} : vector<8x32xbf16>, vector<32x64xbf16>, vector<8x64xf32> -> vector<8x64xf32>
    %296 = vector.broadcast %10 : vector<1x64xf32> to vector<8x64xf32>
    %297 = arith.addf %295, %296 : vector<8x64xf32>
    %cst_79 = arith.constant 0.000000e+00 : f32
    %298 = vector.broadcast %cst_79 : f32 to vector<8x64xf32>
    %299 = arith.maximumf %297, %298 : vector<8x64xf32>
    %300 = arith.truncf %299 : vector<8x64xf32> to vector<8x64xbf16>
    %cst_80 = arith.constant dense<0.000000e+00> : vector<8x32xf32>
    %301 = tpu.matmul %300, %11, %cst_80 {dimension_numbers = #tpu.dot_dimension_numbers<[1], [0], [0], [1], [0, 0, 1, 1], [], []>} : vector<8x64xbf16>, vector<64x32xbf16>, vector<8x32xf32> -> vector<8x32xf32>
    %302 = vector.broadcast %12 : vector<1x32xf32> to vector<8x32xf32>
    %303 = arith.addf %301, %302 : vector<8x32xf32>
    %304 = arith.addf %293, %303 : vector<8x32xf32>
    %cst_81 = arith.constant dense<0.000000e+00> : vector<8xf32>
    %305 = vector.multi_reduction <add>, %304, %cst_81 [1] : vector<8x32xf32> to vector<8xf32>
    %306 = vector.shape_cast %305 : vector<8xf32> to vector<8x1xf32>
    %cst_82 = arith.constant 3.200000e+01 : f32
    %307 = vector.broadcast %cst_82 : f32 to vector<8x1xf32>
    %308 = arith.divf %306, %307 : vector<8x1xf32>
    %309 = vector.broadcast %308 : vector<8x1xf32> to vector<8x32xf32>
    %310 = arith.subf %304, %309 : vector<8x32xf32>
    %311 = arith.mulf %310, %310 : vector<8x32xf32>
    %cst_83 = arith.constant dense<0.000000e+00> : vector<8xf32>
    %312 = vector.multi_reduction <add>, %311, %cst_83 [1] : vector<8x32xf32> to vector<8xf32>
    %313 = vector.shape_cast %312 : vector<8xf32> to vector<8x1xf32>
    %cst_84 = arith.constant 3.200000e+01 : f32
    %314 = vector.broadcast %cst_84 : f32 to vector<8x1xf32>
    %315 = arith.divf %313, %314 : vector<8x1xf32>
    %316 = vector.broadcast %308 : vector<8x1xf32> to vector<8x32xf32>
    %317 = arith.subf %304, %316 : vector<8x32xf32>
    %cst_85 = arith.constant 9.99999974E-6 : f32
    %318 = vector.broadcast %cst_85 : f32 to vector<8x1xf32>
    %319 = arith.addf %315, %318 : vector<8x1xf32>
    %320 = math.rsqrt %319 : vector<8x1xf32>
    %321 = vector.broadcast %320 : vector<8x1xf32> to vector<8x32xf32>
    %322 = arith.mulf %317, %321 : vector<8x32xf32>
    %323 = vector.broadcast %7 : vector<1x32xf32> to vector<8x32xf32>
    %324 = arith.mulf %322, %323 : vector<8x32xf32>
    %325 = vector.broadcast %8 : vector<1x32xf32> to vector<8x32xf32>
    %326 = arith.addf %324, %325 : vector<8x32xf32>
    %c0_86 = arith.constant 0 : index
    %c0_87 = arith.constant 0 : index
    %327 = vector.load %arg14[%c0_86, %c0_87] : memref<1x32xf32, #tpu.memory_space<vmem>>, vector<1x32xf32>
    %c0_88 = arith.constant 0 : index
    %c0_89 = arith.constant 0 : index
    %328 = vector.load %arg15[%c0_88, %c0_89] : memref<1x32xf32, #tpu.memory_space<vmem>>, vector<1x32xf32>
    %cst_90 = arith.constant dense<0.000000e+00> : vector<8xf32>
    %329 = vector.multi_reduction <add>, %326, %cst_90 [1] : vector<8x32xf32> to vector<8xf32>
    %330 = vector.shape_cast %329 : vector<8xf32> to vector<8x1xf32>
    %cst_91 = arith.constant 3.200000e+01 : f32
    %331 = vector.broadcast %cst_91 : f32 to vector<8x1xf32>
    %332 = arith.divf %330, %331 : vector<8x1xf32>
    %333 = vector.broadcast %332 : vector<8x1xf32> to vector<8x32xf32>
    %334 = arith.subf %326, %333 : vector<8x32xf32>
    %335 = arith.mulf %334, %334 : vector<8x32xf32>
    %cst_92 = arith.constant dense<0.000000e+00> : vector<8xf32>
    %336 = vector.multi_reduction <add>, %335, %cst_92 [1] : vector<8x32xf32> to vector<8xf32>
    %337 = vector.shape_cast %336 : vector<8xf32> to vector<8x1xf32>
    %cst_93 = arith.constant 3.200000e+01 : f32
    %338 = vector.broadcast %cst_93 : f32 to vector<8x1xf32>
    %339 = arith.divf %337, %338 : vector<8x1xf32>
    %340 = vector.broadcast %332 : vector<8x1xf32> to vector<8x32xf32>
    %341 = arith.subf %326, %340 : vector<8x32xf32>
    %cst_94 = arith.constant 9.99999974E-6 : f32
    %342 = vector.broadcast %cst_94 : f32 to vector<8x1xf32>
    %343 = arith.addf %339, %342 : vector<8x1xf32>
    %344 = math.rsqrt %343 : vector<8x1xf32>
    %345 = vector.broadcast %344 : vector<8x1xf32> to vector<8x32xf32>
    %346 = arith.mulf %341, %345 : vector<8x32xf32>
    %347 = vector.broadcast %327 : vector<1x32xf32> to vector<8x32xf32>
    %348 = arith.mulf %346, %347 : vector<8x32xf32>
    %349 = vector.broadcast %328 : vector<1x32xf32> to vector<8x32xf32>
    %350 = arith.addf %348, %349 : vector<8x32xf32>
    %c0_95 = arith.constant 0 : index
    %c0_96 = arith.constant 0 : index
    %351 = vector.load %arg16[%c0_95, %c0_96] : memref<8x32xf32, #tpu.memory_space<vmem>>, vector<8x32xf32>
    tpu.vector_store %arg16[%c0_95, %c0_96], %350 {strides = array<i32>} : memref<8x32xf32, #tpu.memory_space<vmem>>, vector<8x32xf32>,
    return
  }
  func.func @transform_0(%arg0: i32) -> (i32, i32) {
    %c0_i32 = arith.constant 0 : i32
    %c0_i32_0 = arith.constant 0 : i32
    return %arg0, %c0_i32 : i32, i32
  }
  func.func @transform_1(%arg0: i32) -> (i32, i32) {
    %c0_i32 = arith.constant 0 : i32
    %c0_i32_0 = arith.constant 0 : i32
    %c0_i32_1 = arith.constant 0 : i32
    return %c0_i32, %c0_i32_0 : i32, i32
  }
  func.func @transform_2(%arg0: i32) -> (i32, i32) {
    %c0_i32 = arith.constant 0 : i32
    %c0_i32_0 = arith.constant 0 : i32
    %c0_i32_1 = arith.constant 0 : i32
    return %c0_i32, %c0_i32_0 : i32, i32
  }
  func.func @transform_3(%arg0: i32) -> (i32, i32) {
    %c0_i32 = arith.constant 0 : i32
    %c0_i32_0 = arith.constant 0 : i32
    %c0_i32_1 = arith.constant 0 : i32
    return %c0_i32, %c0_i32_0 : i32, i32
  }
  func.func @transform_4(%arg0: i32) -> (i32, i32) {
    %c0_i32 = arith.constant 0 : i32
    %c0_i32_0 = arith.constant 0 : i32
    %c0_i32_1 = arith.constant 0 : i32
    return %c0_i32, %c0_i32_0 : i32, i32
  }
  func.func @transform_5(%arg0: i32) -> (i32, i32) {
    %c0_i32 = arith.constant 0 : i32
    %c0_i32_0 = arith.constant 0 : i32
    %c0_i32_1 = arith.constant 0 : i32
    return %c0_i32, %c0_i32_0 : i32, i32
  }
  func.func @transform_6(%arg0: i32) -> (i32, i32) {
    %c0_i32 = arith.constant 0 : i32
    %c0_i32_0 = arith.constant 0 : i32
    %c0_i32_1 = arith.constant 0 : i32
    return %c0_i32, %c0_i32_0 : i32, i32
  }
  func.func @transform_7(%arg0: i32) -> (i32, i32) {
    %c0_i32 = arith.constant 0 : i32
    %c0_i32_0 = arith.constant 0 : i32
    %c0_i32_1 = arith.constant 0 : i32
    return %c0_i32, %c0_i32_0 : i32, i32
  }
  func.func @transform_8(%arg0: i32) -> (i32, i32) {
    %c0_i32 = arith.constant 0 : i32
    %c0_i32_0 = arith.constant 0 : i32
    %c0_i32_1 = arith.constant 0 : i32
    return %c0_i32, %c0_i32_0 : i32, i32
  }
  func.func @transform_9(%arg0: i32) -> (i32, i32) {
    %c0_i32 = arith.constant 0 : i32
    %c0_i32_0 = arith.constant 0 : i32
    %c0_i32_1 = arith.constant 0 : i32
    return %c0_i32, %c0_i32_0 : i32, i32
  }
  func.func @transform_10(%arg0: i32) -> (i32, i32) {
    %c0_i32 = arith.constant 0 : i32
    %c0_i32_0 = arith.constant 0 : i32
    %c0_i32_1 = arith.constant 0 : i32
    return %c0_i32, %c0_i32_0 : i32, i32
  }
  func.func @transform_11(%arg0: i32) -> (i32, i32) {
    %c0_i32 = arith.constant 0 : i32
    %c0_i32_0 = arith.constant 0 : i32
    %c0_i32_1 = arith.constant 0 : i32
    return %c0_i32, %c0_i32_0 : i32, i32
  }
  func.func @transform_12(%arg0: i32) -> (i32, i32) {
    %c0_i32 = arith.constant 0 : i32
    %c0_i32_0 = arith.constant 0 : i32
    %c0_i32_1 = arith.constant 0 : i32
    return %c0_i32, %c0_i32_0 : i32, i32
  }
  func.func @transform_13(%arg0: i32) -> (i32, i32) {
    %c0_i32 = arith.constant 0 : i32
    %c0_i32_0 = arith.constant 0 : i32
    %c0_i32_1 = arith.constant 0 : i32
    return %c0_i32, %c0_i32_0 : i32, i32
  }
  func.func @transform_14(%arg0: i32) -> (i32, i32) {
    %c0_i32 = arith.constant 0 : i32
    %c0_i32_0 = arith.constant 0 : i32
    %c0_i32_1 = arith.constant 0 : i32
    return %c0_i32, %c0_i32_0 : i32, i32
  }
  func.func @transform_15(%arg0: i32) -> (i32, i32) {
    %c0_i32 = arith.constant 0 : i32
    %c0_i32_0 = arith.constant 0 : i32
    return %arg0, %c0_i32 : i32, i32
  }
}

</mosaic_0001>

<bundles_post_ra>
// kernel: encoder_forward.1
= control target key start
LH: loop header
LB: loop body
LE: loop exit
PB: predicated region body
PF: predicated region fallthrough
CT: control target
= control target key end

     0   :  { %s2247_s0 = inlined_call_operand.vmem [shape: f32[16,32], index: 0, kind: input, shape index: {}]   ;;  %s2248_s1 = inlined_call_operand.vmem [shape: bf16[32,96], index: 1, kind: input, shape index: {}]   ;;  %s2249_s2 = inlined_call_operand.vmem [shape: f32[1,96], index: 2, kind: input, shape index: {}]   ;;  %s2250_s3 = inlined_call_operand.vmem [shape: bf16[32,32], index: 3, kind: input, shape index: {}]   ;;  %s2251_s4 = inlined_call_operand.vmem [shape: f32[1,32], index: 4, kind: input, shape index: {}]   ;;  %s2252_s5 = inlined_call_operand.vmem [shape: f32[1,32], index: 5, kind: input, shape index: {}]   ;;  %s2253_s6 = inlined_call_operand.vmem [shape: f32[1,32], index: 6, kind: input, shape index: {}]   ;;  %s2254_s7 = inlined_call_operand.hbm [shape: bf16[32,64], index: 7, kind: input, shape index: {}]   ;;  %s2255_s8 = inlined_call_operand.vmem [shape: f32[1,64], index: 8, kind: input, shape index: {}]   ;;  %s2256_s9 = inlined_call_operand.vmem [shape: bf16[64,32], index: 9, kind: input, shape index: {}]   ;;  %s2257_s10 = inlined_call_operand.vmem [shape: f32[1,32], index: 10, kind: input, shape index: {}]   ;;  %s2258_s11 = inlined_call_operand.vmem [shape: f32[1,32], index: 11, kind: input, shape index: {}]   ;;  %s2259_s12 = inlined_call_operand.vmem [shape: f32[1,32], index: 12, kind: input, shape index: {}]   ;;  %s2260_s13 = inlined_call_operand.vmem [shape: f32[1,32], index: 13, kind: input, shape index: {}]   ;;  %s2261_s14 = inlined_call_operand.vmem [shape: f32[1,32], index: 14, kind: input, shape index: {}]   ;;  %s2262_s15 = inlined_call_operand.hbm [shape: f32[16,32], index: 15, kind: output, shape index: {}]  }
   0x1   :  { %2276 = sst [smem:[#allocation12_spill]] %s2247_s0 }
   0x2   :  { %2277 = sst [smem:[#allocation13_spill]] %s2254_s7 }
   0x3   :  { %20 = vsyncpa [#allocation3], 0 }
   0x4   :  { %21 = vsyncpa [#allocation4], 0 }
   0x5   :  { %23 = vsyncpa [#allocation4 + $0x1], 0  ;;  %s1877_s18 = smov 0   ;;  %s1879_s19 = smov 0  }
   0x6   :  { %s1881_s20 = smov 0   ;;  %s1883_s21 = smov 0  }
   0x7 LB: > { %2278 = sst [smem:[#allocation8_spill]] %s1773_s20  ;;  %s1898_s22 = sadd.s32 4294967295, %s1777_s21   ;;  %s1777_s21 = sphi %s1883_s21, %s2296_s21   ;;  %s1773_s20 = sphi %s1881_s20, %s2298_s20   ;;  %s1769_s19 = sphi %s1879_s19, %s2300_s19   ;;  %s1765_s18 = sphi %s1877_s18, %s2299_s18  }
   0x8   : > { %s1474_s23 = sadd.s32 4294967294, %s1777_s21   ;;  %s1902_s24 = sadd.s32 1, %s1777_s21  }
   0x9   : > { %2279 = sst [smem:[#allocation9_spill]] %s1902_s24  ;;  %s356_s25 = sadd.s32 1, %s1773_s20 }
   0xa   : > { %s353_s26 = ssub.s32 %s1777_s21, %s1902_s24  ;;  %p366_p0 = scmp.ne.s32.totalorder %s1773_s20, %s1769_s19 }
   0xb   : > { %p354_p1 = scmp.eq.s32.totalorder %s353_s26, 0  ;;  %p367_p2 = scmp.eq.s32.totalorder %s1898_s22, 1 }
   0xc   : > { %p372_p3 = scmp.ne.s32.totalorder %s1769_s19, %s1765_s18  ;;  %p373_p4 = scmp.eq.s32.totalorder %s1474_s23, 1 }
   0xd   : > { %s1913_s27 = scalar_select %p354_p1, %s1773_s20, %s356_s25  }
   0xe   : > { %p1915_p5 = por %p367_p2, %p366_p0  ;;  %p1919_p6 = por %p373_p4, %p372_p3 }
   0xf   : > { %2280 = sst [smem:[#allocation10_spill]] %s1913_s27  ;;  %p1475_p7 = scmp.ge.s32.totalorder %s1777_s21, 1 }
  0x10   : > { %s2282_s29 = scalar_select %p1919_p6, 1, 0 }
  0x11   : > { %p380_p8 = scmp.lt.s32.totalorder %s1777_s21, 3  ;;  %p1574_p9 = scmp.eq.s32.totalorder %s1898_s22, 0 }
  0x12   : > { %2283 = sst [smem:[#allocation11_spill]] %s2282_s29  ;;  %s1779_s23 = smov [#allocation2]  }
  0x13   : > { %p381_p10 = pnand %p1475_p7, %p380_p8  ;;  %s2284_s7 = sld [smem:[#allocation13_spill]] }
  0x14   : > { %s411_s25 = sshll.u32 %s1779_s23, 4  ;;  %s1780_s26 = smov 64   ;;  %s412_s25 = int_to_ptr.vmem [resolvable:$true] %s411_s25 }
  0x15   : > { %p1566_p11 = pneg %p381_p10  ;;  %s1781_s27 = smov 4  }
  0x16   : > { %455 = sbr.rel (%p381_p10) target bundleno = 4033 (0xfc1), region = 80 }
  0x17   : > { %p1567_p12 = pnand %p1574_p9, %p1566_p11 }
  0x19   : > { %s409_s17 = sshll.u32 %s2284_s7, 4  ;;  %s410_s17 = int_to_ptr.hbm [resolvable:$true] %s409_s17 }
  0x1a   : > { %1569 = dma.hbm_to_vmem [thread:$0]  (!%p1567_p12), %s410_s17, 256, %s412_s25, [#allocation3], %s1780_s26, %s1780_s26, %s1781_s27  }
  0x1b   : > { %1756 = dma.done.wait (%p1574_p9), [#allocation3], 256  }
  0x1c   : > { %1758 = vsyncadd (%p1574_p9), [#allocation3], 4294967040  ;;  %p503_p13 = scmp.lt.s32.totalorder %s1898_s22, 1  ;;  %s2285_s0 = sld [smem:[#allocation12_spill]]  ;;  %v1943_v0 = vld [vmem:[%s2248_s1 + $0x8] sm:$0xff]  ;;  %v1948_v1 = vld [vmem:[%s2248_s1] sm:$0xff] }
  0x1d   : > { %563 = vmatpush.bf16.msra.mxu0 %v1943_v0  ;;  %vm553_vm0 = vcmask 261120   ;;  %v1960_v4 = vld [vmem:[%s2249_s2] ss:$0 sm:$0xff]  ;;  %s1783_s29 = smov 120   ;;  %s1784_s25 = smov 96   ;;  %vm576_vm1 = vcmask 64512  }
  0x1e   : > { %s504_s30 = scalar_select %p503_p13, %s1898_s22, 1  ;;  %vm613_vm2 = vcmask 1043456   ;;  %vm811_vm3 = vcmask 130048   ;;  %vm813_vm4 = vcmask 195584   ;;  %vm946_vm9 = vcmask 523264  }
  0x1f   : > { %s1785_s26 = smov 80   ;;  %s2271_s23 = smov 112  }
  0x20   : > { %s1481_s16 = sshll.u32 %s504_s30, 3  ;;  %s1786_s30 = smov 72  }
  0x21   : > { %564 = vmatpush.bf16.msra.mxu0 %v1948_v1  ;;  %s2268_s27 = smov 64   ;;  %s2267_s17 = smov 40  }
  0x22   : > { %s506_s20 = scalar_lea.vmem %s2285_s0, %s1481_s16  ;;  %s1787_s16 = smov 88  }
  0x23   : > { %v1950_v2 = vld [vmem:[%s506_s20] sm:$0xff]  ;;  %s2272_s20 = smov 104   ;;  %s2270_s7 = smov 56  }
  0x24   : > { %v537_v3 = vpack.c.bf16 %v1950_v2, %v1950_v2  ;;  %s2269_s24 = smov 48  }
  0x26   : > { %1490 = vmatmul.msk.bf16.vlgmr.msra.gmra.mxu0 %vm553_vm0, %v537_v3 }
  0xa3   : > { %v566_v5 = vpop.f32.mrf.mxu0 }
  0xa4   : > { %v567_v6 = vadd.f32 %v1960_v4, %v566_v5 }
  0xa6   : > { %v570_v7 = vpack.c.bf16 %v567_v6, %v567_v6 }
  0xa8   : > { %v572_v8 = vunpack.c.l.b16 %v570_v7 }
  0xaa   : > { %v1963_v9 = vpack.c.b16 %v572_v8, %v572_v8 }
  0xab   : > { %v568_v10 = vpop.f32.mrf.mxu0 }
  0xac   : > { %742 = vrot.lane.b32.xlu2 %v1963_v9, %s2272_s20  ;;  %630 = vrot.lane.b32.xlu1 %v1963_v9, %s1783_s29 }
  0xad   : > { %574 = vrot.lane.b32.xlu0 %v1963_v9, %s1784_s25 }
  0xb4   : > { %688 = vrot.lane.b32.xlu2 %v1963_v9, %s1785_s26  ;;  %744 = vrot.lane.b32.xlu1 %v1963_v9, %s1786_s30 }
  0xb5   : > { %632 = vrot.lane.b32.xlu0 %v1963_v9, %s1787_s16 }
  0xbd   : > { %686 = vrot.lane.b32.xlu0 %v1963_v9, %s2271_s23  ;;  %s500_s23 = sand.u32 1, %s1769_s19  }
  0xbe   : > { %s1480_s20 = sshll.u32 %s500_s23, 3 }
 0x106   : > { %v743_v11 = vpop.permute.xlu2 %742 }
 0x10e   : > { %v689_v12 = vpop.permute.xlu2 %688 }
 0x10f   : > { %v694_v13 = vsel %vm576_vm1, %v689_v12, 0 }
 0x110   : > { %703 = vmatpush.bf16.xpose.msrb.mxu0 %v694_v13 }
 0x11e   : > { %v631_v14 = vpop.permute.xlu1 %630 }
 0x11f   : > { %v575_v15 = vpop.permute.xlu0 %574 }
 0x120   : > { %v581_v16 = vsel %vm576_vm1, %v575_v15, 0 }
 0x121   : > { %590 = vmatpush.bf16.xpose.msra.mxu1 %v581_v16 }
 0x126   : > { %v745_v17 = vpop.permute.xlu1 %744 }
 0x127   : > { %v633_v18 = vpop.permute.xlu0 %632  ;;  %v750_v19 = vsel %vm576_vm1, %v745_v17, 0 }
 0x128   : > { %1491 = vmatmul.msk.bf16.vlgmr.msra.gmra.mxu1 %vm576_vm1, %v570_v7  ;;  %v638_v20 = vsel %vm576_vm1, %v633_v18, 0 }
 0x129   : > { %647 = vmatpush.bf16.xpose.msra.mxu3 %v638_v20 }
 0x12f   : > { %v687_v21 = vpop.permute.xlu0 %686 }
 0x130   : > { %1493 = vmatmul.msk.bf16.vlgmr.msra.gmra.mxu3 %vm576_vm1, %v631_v14  ;;  %1495 = vmatmul.msk.bf16.vlgmr.msrb.gmra.mxu0 %vm576_vm1, %v687_v21 }
 0x131   : > { %759 = vmatpush.bf16.xpose.msrb.mxu3 %v750_v19 }
 0x140   : > { %1497 = vmatmul.msk.bf16.vlgmr.msrb.gmra.mxu3 %vm576_vm1, %v743_v11 }
 0x1a5   : > { %v592_v22 = vpop.f32.mrf.mxu1 }
 0x1a6   : > { %v596_v23 = vsel %vm576_vm1, %v592_v22, -inf }
 0x1a7   : > { %597 = vmax.xlane.f32.xlu1 %v596_v23 }
 0x1ad   : > { %v594_v24 = vpop.f32.mrf.mxu1  ;;  %v705_v25 = vpop.f32.mrf.mxu0 }
 0x1ae   : > { %v709_v30 = vsel %vm576_vm1, %v705_v25, -inf  ;;  %v2019_v24 = vld [vmem:[%s2250_s3 + $0x8] sm:$0xff] }
 0x1af   : > { %840 = vmatpush.bf16.msra.mxu0 %v2019_v24 }
 0x1b3   : > { %v649_v26 = vpop.f32.mrf.mxu3 }
 0x1b4   : > { %v653_v27 = vsel %vm576_vm1, %v649_v26, -inf }
 0x1b5   : > { %654 = vmax.xlane.f32.xlu2 %v653_v27  ;;  %v707_v28 = vpop.f32.mrf.mxu0 }
 0x1bb   : > { %v651_v29 = vpop.f32.mrf.mxu3 }
 0x1bd   : > { %710 = vmax.xlane.f32.xlu2 %v709_v30 }
 0x1c3   : > { %v761_v31 = vpop.f32.mrf.mxu3 }
 0x1c4   : > { %v765_v32 = vsel %vm576_vm1, %v761_v31, -inf }
 0x1c5   : > { %766 = vmax.xlane.f32.xlu0 %v765_v32 }
 0x1cb   : > { %v763_v33 = vpop.f32.mrf.mxu3 }
 0x1cc   : > { %v2035_v33 = vld [vmem:[%s2251_s4] ss:$0 sm:$0xff] }
 0x1d5   : > { %608 = vrot.lane.b32.xlu2 %v1963_v9, %s2268_s27  ;;  %s2275_s27 = smov 16  }
 0x1dd   : > { %777 = vrot.lane.b32.xlu2 %v1963_v9, %s2267_s17  ;;  %s2273_s17 = smov 8  }
 0x21a   : > { %v598_v34 = vpop.xlane.xlu1 %597 }
 0x21b   : > { %v599_v35 = vsub.f32 %v592_v22, %v598_v34 }
 0x21d   : > { %v600_v36 = vmul.f32 1.442695, %v599_v35 }
 0x21f   : > { %1637 = vpow2.f32 %v600_v36 }
 0x225   : > { %v1638_v37 = vpop.eup %1637 }
 0x226   : > { %v602_v38 = vsel %vm576_vm1, %v1638_v37, 0.0 }
 0x227   : > { %603 = vadd.xlane.f32.xlu1 %v602_v38 }
 0x228   : > { %v655_v39 = vpop.xlane.xlu2 %654 }
 0x229   : > { %v656_v42 = vsub.f32 %v649_v26, %v655_v39  ;;  %v1796_v39 = vmov 32.0  }
 0x22b   : > { %v657_v44 = vmul.f32 1.442695, %v656_v42 }
 0x230   : > { %v711_v40 = vpop.xlane.xlu2 %710 }
 0x231   : > { %v712_v41 = vsub.f32 %v705_v25, %v711_v40  ;;  %v2025_v25 = vld [vmem:[%s2250_s3] sm:$0xff] }
 0x232   : > { %841 = vmatpush.bf16.msra.mxu0 %v2025_v25 }
 0x233   : > { %v713_v43 = vmul.f32 1.442695, %v712_v41 }
 0x235   : > { %1639 = vpow2.f32 %v713_v43 }
 0x236   : > { %1641 = vpow2.f32 %v657_v44 }
 0x238   : > { %v609_v45 = vpop.permute.xlu2 %608  ;;  %v767_v46 = vpop.xlane.xlu0 %766 }
 0x239   : > { %v615_v47 = vsel %vm613_vm2, %v609_v45, 0  ;;  %v768_v49 = vsub.f32 %v761_v31, %v767_v46 }
 0x23a   : > { %624 = vmatpush.bf16.msra.mxu2 %v615_v47 }
 0x23b   : > { %v1640_v48 = vpop.eup %1639  ;;  %v769_v51 = vmul.f32 1.442695, %v768_v49 }
 0x23c   : > { %v715_v50 = vsel %vm576_vm1, %v1640_v48, 0.0  ;;  %v1642_v52 = vpop.eup %1641 }
 0x23d   : > { %716 = vadd.xlane.f32.xlu0 %v715_v50  ;;  %1643 = vpow2.f32 %v769_v51  ;;  %v659_v53 = vsel %vm576_vm1, %v1642_v52, 0.0  ;;  %v2044_v50 = vld [vmem:[#allocation2 + $0x8] sm:$0xff]  ;;  %v2047_v51 = vld [vmem:[#allocation2] sm:$0xff] }
 0x240   : > { %665 = vrot.lane.b32.xlu1 %v1963_v9, %s2270_s7  ;;  %v778_v61 = vpop.permute.xlu2 %777  ;;  %s2294_s7 = smov 24  }
 0x241   : > { %v783_v3 = vsel %vm613_vm2, %v778_v61, 0 }
 0x243   : > { %v1644_v54 = vpop.eup %1643 }
 0x244   : > { %v771_v55 = vsel %vm576_vm1, %v1644_v54, 0.0 }
 0x245   : > { %660 = vadd.xlane.f32.xlu0 %v659_v53 }
 0x24d   : > { %772 = vadd.xlane.f32.xlu0 %v771_v55  ;;  %v2060_v55 = vld [vmem:[%s2256_s9 + $0x10] sm:$0xff] }
 0x261   : > { %721 = vrot.lane.b32.xlu0 %v1963_v9, %s2269_s24  ;;  %s2274_s24 = smov 24  }
 0x29a   : > { %v604_v56 = vpop.xlane.xlu1 %603 }
 0x29b   : > { %1645 = vrcp.f32 %v604_v56 }
 0x2a1   : > { %v1646_v57 = vpop.eup %1645 }
 0x2a2   : > { %v606_v58 = vmul.f32 %v1646_v57, %v1638_v37 }
 0x2a4   : > { %v607_v59 = vpack.c.bf16 %v606_v58, %v606_v58 }
 0x2a6   : > { %1492 = vmatmul.msk.bf16.vlgmr.msra.gmra.mxu2 %vm576_vm1, %v607_v59 }
 0x2b0   : > { %v717_v60 = vpop.xlane.xlu0 %716 }
 0x2b2   : > { %v666_v62 = vpop.permute.xlu1 %665 }
 0x2b3   : > { %v671_v63 = vsel %vm613_vm2, %v666_v62, 0 }
 0x2b4   : > { %680 = vmatpush.bf16.msrb.mxu2 %v671_v63  ;;  %v2066_v63 = vld [vmem:[%s2252_s5] ss:$0 sm:$0xff] }
 0x2b8   : > { %792 = vmatpush.bf16.msra.mxu2 %v783_v3  ;;  %v661_v5 = vpop.xlane.xlu0 %660 }
 0x2b9   : > { %1647 = vrcp.f32 %v661_v5  ;;  %v2071_v5 = vld [vmem:[%s2253_s6] ss:$0 sm:$0xff] }
 0x2bf   : > { %v1648_v6 = vpop.eup %1647 }
 0x2c0   : > { %v663_v7 = vmul.f32 %v1648_v6, %v1642_v52  ;;  %v773_v8 = vpop.xlane.xlu0 %772  ;;  %v2053_v52 = vld [vmem:[%s2256_s9 + $0x18] sm:$0xff] }
 0x2c1   : > { %1649 = vrcp.f32 %v773_v8  ;;  %954 = vmatpush.bf16.msra.mxu3 %v2053_v52 }
 0x2c2   : > { %v664_v9 = vpack.c.bf16 %v663_v7, %v663_v7  ;;  %1651 = vrcp.f32 %v717_v60 }
 0x2c3   : > { %1653 = vrcp.f32 %v1796_v39  ;;  %v2108_v39 = vld [vmem:[%s2258_s11] ss:$0 sm:$0xff] }
 0x2c4   : > { %1494 = vmatmul.msk.bf16.vlgmr.msrb.gmra.mxu2 %vm576_vm1, %v664_v9 }
 0x2c5   : > { %1004 = vmatpush.bf16.msrb.mxu2 %v1943_v0  ;;  %955 = vmatpush.bf16.msra.mxu3 %v2060_v55 }
 0x2c7   : > { %v1650_v10 = vpop.eup %1649 }
 0x2c8   : > { %v775_v11 = vmul.f32 %v1650_v10, %v1644_v54  ;;  %v1652_v12 = vpop.eup %1651  ;;  %v2079_v10 = vld [vmem:[%s2256_s9 + $0x8] sm:$0xff] }
 0x2c9   : > { %1005 = vmatpush.bf16.msrb.mxu2 %v1948_v1  ;;  %v719_v13 = vmul.f32 %v1652_v12, %v1640_v48  ;;  %v1654_v40 = vpop.eup %1653  ;;  %956 = vmatpush.bf16.msra.mxu3 %v2079_v10  ;;  %v2091_v12 = vld [vmem:[%s2255_s8] ss:$0 sm:$0xff] }
 0x2ca   : > { %v776_v14 = vpack.c.bf16 %v775_v11, %v775_v11  ;;  %v852_v41 = vmul.f32 32.0, %v1654_v40  ;;  %vm856_vm5 = vweird.f32 %v1654_v40  ;;  %v2085_v11 = vld [vmem:[%s2256_s9] sm:$0xff] }
 0x2cb   : > { %v720_v17 = vpack.c.bf16 %v719_v13, %v719_v13 }
 0x2cc   : > { %v853_v42 = vsub.f32 1.0, %v852_v41  ;;  %v2113_v41 = vld [vmem:[%s2259_s12] ss:$0 sm:$0xff] }
 0x2cd   : > { %957 = vmatpush.bf16.msra.mxu3 %v2085_v11 }
 0x2ce   : > { %v854_v43 = vmul.f32 %v1654_v40, %v853_v42 }
 0x2d0   : > { %v855_v44 = vadd.f32 %v1654_v40, %v854_v43 }
 0x2d2   : > { %v2040_v45 = vsel %vm856_vm5, %v1654_v40, %v855_v44 }
 0x2d3   : > { %v722_v15 = vpop.permute.xlu0 %721 }
 0x2d4   : > { %1498 = vmatmul.msk.bf16.vlgmr.msra.gmra.mxu2 %vm576_vm1, %v776_v14  ;;  %v727_v16 = vsel %vm613_vm2, %v722_v15, 0 }
 0x2d5   : > { %736 = vmatpush.bf16.msrb.mxu1 %v727_v16 }
 0x2d8   : > { %1496 = vmatmul.msk.bf16.vlgmr.msrb.gmra.mxu1 %vm576_vm1, %v720_v17 }
 0x2d9   : > { %910 = vmatpush.bf16.msra.mxu1 %v2044_v50 }
 0x2dd   : > { %911 = vmatpush.bf16.msra.mxu1 %v2047_v51 }
 0x329   : > { %v626_v18 = vpop.f32.mrf.mxu2 }
 0x331   : > { %v628_v19 = vpop.f32.mrf.mxu2 }
 0x347   : > { %v682_v0 = vpop.f32.mrf.mxu2 }
 0x348   : > { %799 = vrot.lane.b32.xlu1 %v682_v0, %s2273_s17  ;;  %s2293_s17 = smov 16  }
 0x34f   : > { %v684_v1 = vpop.f32.mrf.mxu2 }
 0x355   : > { %v738_v20 = vpop.f32.mrf.mxu1 }
 0x356   : > { %803 = vrot.lane.b32.xlu2 %v738_v20, %s2275_s27  ;;  %s2286_s27 = smov 104  }
 0x357   : > { %v794_v21 = vpop.f32.mrf.mxu2 }
 0x358   : > { %807 = vrot.lane.b32.xlu1 %v794_v21, %s2274_s24  ;;  %s2287_s24 = smov 112  }
 0x35d   : > { %v740_v22 = vpop.f32.mrf.mxu1 }
 0x35f   : > { %v796_v23 = vpop.f32.mrf.mxu2 }
 0x3b0   : > { %v804_v28 = vpop.permute.xlu2 %803 }
 0x3ba   : > { %v800_v26 = vpop.permute.xlu1 %799 }
 0x3bb   : > { %v810_v27 = vsel %vm576_vm1, %v626_v18, %v800_v26  ;;  %v2098_v18 = vld [vmem:[%s2257_s10] ss:$0 sm:$0xff] }
 0x3bc   : > { %v812_v30 = vsel %vm811_vm3, %v810_v27, %v804_v28 }
 0x3ca   : > { %v808_v29 = vpop.permute.xlu1 %807 }
 0x3cb   : > { %v814_v31 = vsel %vm813_vm4, %v812_v30, %v808_v29 }
 0x3cc   : > { %v815_v32 = vpack.c.bf16 %v814_v31, %v814_v31 }
 0x3ce   : > { %1507 = vmatmul.msk.bf16.vlgmr.msra.gmra.mxu0 %vm553_vm0, %v815_v32 }
 0x44b   : > { %v843_v34 = vpop.f32.mrf.mxu0 }
 0x44c   : > { %v844_v35 = vadd.f32 %v2035_v33, %v843_v34 }
 0x44e   : > { %v847_v36 = vadd.f32 %v844_v35, %v1950_v2 }
 0x450   : > { %v848_v37 = vsel %vm553_vm0, %v847_v36, 0.0 }
 0x451   : > { %849 = vadd.xlane.f32.xlu2 %v848_v37 }
 0x453   : > { %v845_v38 = vpop.f32.mrf.mxu0 }
 0x4c4   : > { %v850_v46 = vpop.xlane.xlu2 %849 }
 0x4c5   : > { %v858_v47 = vmul.f32 %v2040_v45, %v850_v46 }
 0x4c7   : > { %v859_v48 = vsub.f32 %v847_v36, %v858_v47 }
 0x4c9   : > { %v860_v49 = vmul.f32 %v859_v48, %v859_v48 }
 0x4cb   : > { %v861_v2 = vsel %vm553_vm0, %v860_v49, 0.0 }
 0x4cc   : > { %862 = vadd.xlane.f32.xlu1 %v861_v2 }
 0x53f   : > { %v863_v53 = vpop.xlane.xlu1 %862 }
 0x540   : > { %v864_v54 = vmul.f32 %v863_v53, %v2040_v45 }
 0x542   : > { %v865_v56 = vadd.f32 1e-05, %v864_v54 }
 0x544   : > { %1655 = vrsqrt.f32 %v865_v56  ;;  %vm872_vm7 = vweird.f32 %v865_v56 }
 0x54a   : > { %v1656_v57 = vpop.eup %1655 }
 0x54b   : > { %v867_v58 = vmul.f32 %v1656_v57, %v865_v56  ;;  %vm873_vm6 = vweird.f32 %v1656_v57 }
 0x54c   : > { %vm874_vm8 = vmor %vm872_vm7, %vm873_vm6 }
 0x54d   : > { %v868_v59 = vmul.f32 %v1656_v57, %v867_v58 }
 0x54f   : > { %v869_v60 = vmul.f32 0.5, %v868_v59 }
 0x551   : > { %v870_v61 = vsub.f32 1.5, %v869_v60 }
 0x553   : > { %v871_v62 = vmul.f32 %v1656_v57, %v870_v61 }
 0x555   : > { %v875_v3 = vsel %vm874_vm8, %v1656_v57, %v871_v62 }
 0x556   : > { %v876_v6 = vmul.f32 %v875_v3, %v859_v48 }
 0x558   : > { %v880_v7 = vmul.f32 %v2066_v63, %v876_v6 }
 0x55a   : > { %v884_v8 = vadd.f32 %v2071_v5, %v880_v7 }
 0x55c   : > { %v885_v9 = vpack.c.bf16 %v884_v8, %v884_v8 }
 0x55e   : > { %1516 = vmatmul.msk.bf16.vlgmr.msra.gmra.mxu1 %vm553_vm0, %v885_v9 }
 0x5db   : > { %v913_v13 = vpop.f32.mrf.mxu1 }
 0x5dc   : > { %v914_v14 = vadd.f32 %v2091_v12, %v913_v13 }
 0x5de   : > { %v917_v15 = vmax.f32 %v914_v14, 0.0 }
 0x5e0   : > { %v918_v16 = vpack.c.bf16 %v917_v15, %v917_v15 }
 0x5e2   : > { %1533 = vmatmul.msk.bf16.vlgmr.msra.gmra.mxu3 %vm946_vm9, %v918_v16 }
 0x5e3   : > { %v915_v17 = vpop.f32.mrf.mxu1 }
 0x665   : > { %v959_v19 = vpop.f32.mrf.mxu3 }
 0x666   : > { %v960_v0 = vadd.f32 %v2098_v18, %v959_v19 }
 0x668   : > { %v963_v1 = vadd.f32 %v960_v0, %v884_v8 }
 0x66a   : > { %v964_v20 = vsel %vm553_vm0, %v963_v1, 0.0 }
 0x66b   : > { %965 = vadd.xlane.f32.xlu0 %v964_v20 }
 0x66d   : > { %v961_v21 = vpop.f32.mrf.mxu3 }
 0x6de   : > { %v966_v22 = vpop.xlane.xlu0 %965 }
 0x6df   : > { %v967_v23 = vmul.f32 %v966_v22, %v2040_v45 }
 0x6e1   : > { %v968_v26 = vsub.f32 %v963_v1, %v967_v23 }
 0x6e3   : > { %v969_v27 = vmul.f32 %v968_v26, %v968_v26 }
 0x6e5   : > { %v970_v28 = vsel %vm553_vm0, %v969_v27, 0.0 }
 0x6e6   : > { %971 = vadd.xlane.f32.xlu2 %v970_v28 }
 0x759   : > { %v972_v29 = vpop.xlane.xlu2 %971 }
 0x75a   : > { %v973_v30 = vmul.f32 %v972_v29, %v2040_v45 }
 0x75c   : > { %v974_v31 = vadd.f32 1e-05, %v973_v30 }
 0x75e   : > { %1657 = vrsqrt.f32 %v974_v31  ;;  %vm981_vm11 = vweird.f32 %v974_v31 }
 0x764   : > { %v1658_v32 = vpop.eup %1657 }
 0x765   : > { %v976_v34 = vmul.f32 %v1658_v32, %v974_v31  ;;  %vm982_vm10 = vweird.f32 %v1658_v32 }
 0x766   : > { %vm983_vm12 = vmor %vm981_vm11, %vm982_vm10 }
 0x767   : > { %v977_v35 = vmul.f32 %v1658_v32, %v976_v34 }
 0x769   : > { %v978_v36 = vmul.f32 0.5, %v977_v35 }
 0x76b   : > { %v979_v37 = vsub.f32 1.5, %v978_v36 }
 0x76d   : > { %v980_v38 = vmul.f32 %v1658_v32, %v979_v37 }
 0x76f   : > { %v984_v40 = vsel %vm983_vm12, %v1658_v32, %v980_v38 }
 0x770   : > { %v985_v42 = vmul.f32 %v984_v40, %v968_v26 }
 0x772   : > { %v989_v43 = vmul.f32 %v2108_v39, %v985_v42 }
 0x774   : > { %v2117_v44 = vadd.f32 %v2113_v41, %v989_v43 }
 0x776   : > { %v994_v46 = vpack.c.bf16 %v2117_v44, %v2117_v44 }
 0x778   : > { %1534 = vmatmul.msk.bf16.vlgmr.msrb.gmra.mxu2 %vm553_vm0, %v994_v46 }
 0x7fb   : > { %v1007_v47 = vpop.f32.mrf.mxu2 }
 0x7fc   : > { %v1008_v48 = vadd.f32 %v1960_v4, %v1007_v47 }
 0x7fe   : > { %v1011_v49 = vpack.c.bf16 %v1008_v48, %v1008_v48 }
 0x800   : > { %v1013_v2 = vunpack.c.l.b16 %v1011_v49 }
 0x802   : > { %v2123_v53 = vpack.c.b16 %v1013_v2, %v1013_v2 }
 0x803   : > { %v1009_v54 = vpop.f32.mrf.mxu2 }
 0x804   : > { %1015 = vrot.lane.b32.xlu2 %v2123_v53, %s1784_s25  ;;  %1069 = vrot.lane.b32.xlu0 %v2123_v53, %s1783_s29  ;;  %s2288_s29 = smov 56   ;;  %s2289_s25 = smov 48  }
 0x805   : > { %1071 = vrot.lane.b32.xlu1 %v2123_v53, %s1787_s16  ;;  %s2292_s16 = smov 8  }
 0x80c   : > { %1127 = vrot.lane.b32.xlu2 %v2123_v53, %s1785_s26  ;;  %1183 = vrot.lane.b32.xlu0 %v2123_v53, %s1786_s30  ;;  %s2290_s26 = smov 64   ;;  %s2291_s30 = smov 40  }
 0x80d   : > { %1181 = vrot.lane.b32.xlu1 %v2123_v53, %s2286_s27  ;;  %s1547_s27 = sshll.u32 %s1898_s22, 3 }
 0x814   : > { %1125 = vrot.lane.b32.xlu0 %v2123_v53, %s2287_s24  ;;  %s1388_s24 = scalar_lea.sflag [#allocation4], %s500_s23 }
 0x85e   : > { %v1016_v4 = vpop.permute.xlu2 %1015 }
 0x85f   : > { %v1021_v56 = vsel %vm576_vm1, %v1016_v4, 0 }
 0x860   : > { %1030 = vmatpush.bf16.xpose.msrb.mxu0 %v1021_v56 }
 0x866   : > { %v1128_v57 = vpop.permute.xlu2 %1127 }
 0x867   : > { %v1133_v58 = vsel %vm576_vm1, %v1128_v57, 0  ;;  %1535 = vmatmul.msk.bf16.vlgmr.msrb.gmra.mxu0 %vm576_vm1, %v1011_v49 }
 0x868   : > { %1142 = vmatpush.bf16.xpose.msra.mxu0 %v1133_v58 }
 0x870   : > { %1262 = vmatpush.bf16.msrb.mxu0 %v2019_v24 }
 0x874   : > { %1263 = vmatpush.bf16.msrb.mxu0 %v2025_v25 }
 0x876   : > { %v1070_v59 = vpop.permute.xlu0 %1069 }
 0x877   : > { %v1072_v60 = vpop.permute.xlu1 %1071 }
 0x878   : > { %v1077_v61 = vsel %vm576_vm1, %v1072_v60, 0 }
 0x879   : > { %1086 = vmatpush.bf16.xpose.msrb.mxu3 %v1077_v61 }
 0x87e   : > { %v1184_v62 = vpop.permute.xlu0 %1183 }
 0x87f   : > { %v1189_v3 = vsel %vm576_vm1, %v1184_v62, 0  ;;  %v1182_v24 = vpop.permute.xlu1 %1181 }
 0x880   : > { %1537 = vmatmul.msk.bf16.vlgmr.msrb.gmra.mxu3 %vm576_vm1, %v1070_v59 }
 0x881   : > { %1198 = vmatpush.bf16.xpose.msra.mxu3 %v1189_v3 }
 0x886   : > { %v1126_v6 = vpop.permute.xlu0 %1125 }
 0x887   : > { %1539 = vmatmul.msk.bf16.vlgmr.msra.gmra.mxu0 %vm576_vm1, %v1126_v6 }
 0x889   : > { %1320 = vmatpush.bf16.msrb.mxu3 %v2053_v52 }
 0x88d   : > { %1321 = vmatpush.bf16.msrb.mxu3 %v2060_v55 }
 0x890   : > { %1541 = vmatmul.msk.bf16.vlgmr.msra.gmra.mxu3 %vm576_vm1, %v1182_v24 }
 0x891   : > { %1322 = vmatpush.bf16.msrb.mxu3 %v2079_v10 }
 0x895   : > { %1323 = vmatpush.bf16.msrb.mxu3 %v2085_v11 }
 0x8e4   : > { %v1032_v25 = vpop.f32.mrf.mxu0 }
 0x8e5   : > { %v1036_v7 = vsel %vm576_vm1, %v1032_v25, -inf }
 0x8e6   : > { %1037 = vmax.xlane.f32.xlu2 %v1036_v7 }
 0x8ec   : > { %v1034_v8 = vpop.f32.mrf.mxu0 }
 0x903   : > { %v1088_v9 = vpop.f32.mrf.mxu3 }
 0x904   : > { %v1144_v13 = vpop.f32.mrf.mxu0  ;;  %v1092_v52 = vsel %vm576_vm1, %v1088_v9, -inf }
 0x905   : > { %1093 = vmax.xlane.f32.xlu1 %v1092_v52  ;;  %v1148_v15 = vsel %vm576_vm1, %v1144_v13, -inf }
 0x90b   : > { %v1090_v55 = vpop.f32.mrf.mxu3 }
 0x90c   : > { %v1146_v14 = vpop.f32.mrf.mxu0 }
 0x90d   : > { %1149 = vmax.xlane.f32.xlu1 %v1148_v15 }
 0x913   : > { %v1200_v10 = vpop.f32.mrf.mxu3 }
 0x914   : > { %v1204_v11 = vsel %vm576_vm1, %v1200_v10, -inf }
 0x915   : > { %1205 = vmax.xlane.f32.xlu0 %v1204_v11 }
 0x91b   : > { %v1202_v16 = vpop.f32.mrf.mxu3 }
 0x926   : > { %1104 = vrot.lane.b32.xlu1 %v2123_v53, %s2288_s29 }
 0x92e   : > { %1160 = vrot.lane.b32.xlu1 %v2123_v53, %s2289_s25 }
 0x959   : > { %v1038_v17 = vpop.xlane.xlu2 %1037 }
 0x95a   : > { %v1039_v19 = vsub.f32 %v1032_v25, %v1038_v17 }
 0x95c   : > { %v1040_v0 = vmul.f32 1.442695, %v1039_v19 }
 0x95e   : > { %1659 = vpow2.f32 %v1040_v0 }
 0x964   : > { %v1660_v1 = vpop.eup %1659 }
 0x965   : > { %v1042_v20 = vsel %vm576_vm1, %v1660_v1, 0.0 }
 0x966   : > { %1043 = vadd.xlane.f32.xlu0 %v1042_v20 }
 0x978   : > { %v1094_v21 = vpop.xlane.xlu1 %1093 }
 0x979   : > { %v1095_v22 = vsub.f32 %v1088_v9, %v1094_v21 }
 0x97b   : > { %v1096_v23 = vmul.f32 1.442695, %v1095_v22 }
 0x97d   : > { %1661 = vpow2.f32 %v1096_v23 }
 0x980   : > { %v1150_v26 = vpop.xlane.xlu1 %1149 }
 0x981   : > { %v1151_v27 = vsub.f32 %v1144_v13, %v1150_v26 }
 0x983   : > { %v1662_v28 = vpop.eup %1661  ;;  %v1152_v29 = vmul.f32 1.442695, %v1151_v27 }
 0x984   : > { %v1098_v30 = vsel %vm576_vm1, %v1662_v28, 0.0 }
 0x985   : > { %1663 = vpow2.f32 %v1152_v29  ;;  %1099 = vadd.xlane.f32.xlu2 %v1098_v30 }
 0x988   : > { %v1206_v31 = vpop.xlane.xlu0 %1205 }
 0x989   : > { %v1207_v32 = vsub.f32 %v1200_v10, %v1206_v31 }
 0x98b   : > { %v1664_v34 = vpop.eup %1663  ;;  %v1208_v35 = vmul.f32 1.442695, %v1207_v32 }
 0x98c   : > { %v1154_v36 = vsel %vm576_vm1, %v1664_v34, 0.0 }
 0x98d   : > { %1665 = vpow2.f32 %v1208_v35  ;;  %1155 = vadd.xlane.f32.xlu0 %v1154_v36 }
 0x993   : > { %v1666_v37 = vpop.eup %1665 }
 0x994   : > { %v1210_v38 = vsel %vm576_vm1, %v1666_v37, 0.0 }
 0x995   : > { %1211 = vadd.xlane.f32.xlu0 %v1210_v38 }
 0x998   : > { %v1105_v40 = vpop.permute.xlu1 %1104 }
 0x999   : > { %v1110_v42 = vsel %vm613_vm2, %v1105_v40, 0 }
 0x99a   : > { %1119 = vmatpush.bf16.msra.mxu2 %v1110_v42 }
 0x99d   : > { %1048 = vrot.lane.b32.xlu2 %v2123_v53, %s2290_s26 }
 0x9a0   : > { %v1161_v49 = vpop.permute.xlu1 %1160 }
 0x9a1   : > { %v1166_v57 = vsel %vm613_vm2, %v1161_v49, 0 }
 0x9a9   : > { %1216 = vrot.lane.b32.xlu0 %v2123_v53, %s2291_s30  ;;  %s1398_s30 = scalar_lea.hbm %s2262_s15, %s1547_s27 }
 0x9aa   : > { %s1402_s0 = sshll.u32 %s1398_s30, 4  ;;  %s1403_s0 = int_to_ptr.hbm [resolvable:$true] %s1402_s0 }
 0x9ab   : > { %s1725_s29 = sshra.s32 %s1403_s0, 4  ;;  %s1726_s29 = int_to_ptr.hbm [resolvable:$true] %s1725_s29 }
 0x9ac   : > { %s1727_s27 = scalar_lea.hbm %s1726_s29, 8  ;;  %p1732_p3 = scmp.lt.s32.totalorder %s1726_s29, %s2262_s15 }
 0x9ad   : > { %p1728_p0 = scmp.ne.s32.totalorder %s1726_s29, %s1727_s27 }
 0x9af   : > { %p1729_p1 = pnand %p1728_p0, %p1915_p5 }
 0x9b1   : > { %p1730_p2 = pneg %p1729_p1 }
 0x9d9   : > { %v1044_v43 = vpop.xlane.xlu0 %1043 }
 0x9da   : > { %1667 = vrcp.f32 %v1044_v43 }
 0x9e0   : > { %v1668_v47 = vpop.eup %1667 }
 0x9e1   : > { %v1046_v2 = vmul.f32 %v1668_v47, %v1660_v1 }
 0x9e3   : > { %v1047_v59 = vpack.c.bf16 %v1046_v2, %v1046_v2 }
 0x9f8   : > { %v1100_v46 = vpop.xlane.xlu2 %1099 }
 0x9f9   : > { %1669 = vrcp.f32 %v1100_v46 }
 0x9ff   : > { %v1670_v48 = vpop.eup %1669 }
 0xa00   : > { %v1102_v54 = vmul.f32 %v1670_v48, %v1662_v28  ;;  %v1049_v4 = vpop.permute.xlu2 %1048  ;;  %v1156_v60 = vpop.xlane.xlu0 %1155 }
 0xa01   : > { %v1054_v56 = vsel %vm613_vm2, %v1049_v4, 0  ;;  %1671 = vrcp.f32 %v1156_v60 }
 0xa02   : > { %v1103_v58 = vpack.c.bf16 %v1102_v54, %v1102_v54  ;;  %1063 = vmatpush.bf16.msrb.mxu1 %v1054_v56 }
 0xa04   : > { %1538 = vmatmul.msk.bf16.vlgmr.msra.gmra.mxu2 %vm576_vm1, %v1103_v58 }
 0xa05   : > { %1536 = vmatmul.msk.bf16.vlgmr.msrb.gmra.mxu1 %vm576_vm1, %v1047_v59 }
 0xa06   : > { %1175 = vmatpush.bf16.msra.mxu1 %v1166_v57 }
 0xa07   : > { %v1672_v53 = vpop.eup %1671 }
 0xa08   : > { %v1212_v61 = vpop.xlane.xlu0 %1211  ;;  %v1158_v62 = vmul.f32 %v1672_v53, %v1664_v34 }
 0xa09   : > { %1673 = vrcp.f32 %v1212_v61 }
 0xa0a   : > { %1304 = vmatpush.bf16.msrb.mxu1 %v2044_v50  ;;  %v1159_v3 = vpack.c.bf16 %v1158_v62, %v1158_v62 }
 0xa0e   : > { %1305 = vmatpush.bf16.msrb.mxu1 %v2047_v51 }
 0xa0f   : > { %v1674_v6 = vpop.eup %1673 }
 0xa10   : > { %v1214_v24 = vmul.f32 %v1674_v6, %v1666_v37 }
 0xa12   : > { %v1215_v8 = vpack.c.bf16 %v1214_v24, %v1214_v24 }
 0xa15   : > { %1540 = vmatmul.msk.bf16.vlgmr.msra.gmra.mxu1 %vm576_vm1, %v1159_v3 }
 0xa1b   : > { %v1217_v25 = vpop.permute.xlu0 %1216 }
 0xa1c   : > { %v1222_v7 = vsel %vm613_vm2, %v1217_v25, 0 }
 0xa1d   : > { %1231 = vmatpush.bf16.msrb.mxu2 %v1222_v7 }
 0xa20   : > { %1542 = vmatmul.msk.bf16.vlgmr.msrb.gmra.mxu2 %vm576_vm1, %v1215_v8 }
 0xa82   : > { %v1065_v9 = vpop.f32.mrf.mxu1 }
 0xa87   : > { %v1121_v50 = vpop.f32.mrf.mxu2 }
 0xa88   : > { %1238 = vrot.lane.b32.xlu2 %v1121_v50, %s2292_s16 }
 0xa8a   : > { %v1067_v51 = vpop.f32.mrf.mxu1 }
 0xa8f   : > { %v1123_v13 = vpop.f32.mrf.mxu2 }
 0xa92   : > { %v1177_v52 = vpop.f32.mrf.mxu1 }
 0xa93   : > { %1242 = vrot.lane.b32.xlu1 %v1177_v52, %s2293_s17 }
 0xa9a   : > { %v1179_v55 = vpop.f32.mrf.mxu1 }
 0xaa3   : > { %v1233_v14 = vpop.f32.mrf.mxu2 }
 0xaa4   : > { %1246 = vrot.lane.b32.xlu2 %v1233_v14, %s2294_s7  ;;  %s502_s7 = scalar_lea.vmem [#allocation5], %s1480_s20  ;;  %s1731_s20 = scalar_lea.hbm %s2262_s15, 16 }
 0xaa5   : > { %s1400_s22 = sshll.u32 %s502_s7, 4  ;;  %p1733_p4 = scmp.lt.s32.totalorder %s1731_s20, %s1727_s27  ;;  %s1401_s22 = int_to_ptr.vmem [resolvable:$true] %s1400_s22 }
 0xaa7   : > { %p1734_p7 = por %p1733_p4, %p1732_p3 }
 0xaa9   : > { %p1735_p8 = pnand %p1734_p7, %p1730_p2 }
 0xaab   : > { %v1235_v15 = vpop.f32.mrf.mxu2 }
 0xae2   : > { %v1239_v10 = vpop.permute.xlu2 %1238 }
 0xae3   : > { %v1249_v11 = vsel %vm576_vm1, %v1065_v9, %v1239_v10 }
 0xafe   : > { %v1247_v17 = vpop.permute.xlu2 %1246 }
 0xb05   : > { %v1243_v16 = vpop.permute.xlu1 %1242 }
 0xb06   : > { %v1250_v19 = vsel %vm811_vm3, %v1249_v11, %v1243_v16 }
 0xb07   : > { %v1251_v0 = vsel %vm813_vm4, %v1250_v19, %v1247_v17 }
 0xb08   : > { %v1252_v1 = vpack.c.bf16 %v1251_v0, %v1251_v0 }
 0xb0a   : > { %1543 = vmatmul.msk.bf16.vlgmr.msrb.gmra.mxu0 %vm553_vm0, %v1252_v1 }
 0xb87   : > { %v1265_v20 = vpop.f32.mrf.mxu0 }
 0xb88   : > { %v1266_v21 = vadd.f32 %v2035_v33, %v1265_v20 }
 0xb8a   : > { %v1269_v22 = vadd.f32 %v1266_v21, %v2117_v44 }
 0xb8c   : > { %v1270_v23 = vsel %vm553_vm0, %v1269_v22, 0.0 }
 0xb8d   : > { %1271 = vadd.xlane.f32.xlu1 %v1270_v23 }
 0xb8f   : > { %v1267_v26 = vpop.f32.mrf.mxu0 }
 0xb90   : > { %v1635_v26 = vld [vmem:[%s2260_s13] ss:$0 sm:$0xff] }
 0xc00   : > { %v1272_v27 = vpop.xlane.xlu1 %1271 }
 0xc01   : > { %v1273_v28 = vmul.f32 %v1272_v27, %v2040_v45 }
 0xc03   : > { %v1274_v29 = vsub.f32 %v1269_v22, %v1273_v28  ;;  %v1636_v28 = vld [vmem:[%s2261_s14] ss:$0 sm:$0xff] }
 0xc05   : > { %v1275_v30 = vmul.f32 %v1274_v29, %v1274_v29 }
 0xc07   : > { %v1276_v31 = vsel %vm553_vm0, %v1275_v30, 0.0 }
 0xc08   : > { %1277 = vadd.xlane.f32.xlu0 %v1276_v31 }
 0xc7b   : > { %v1278_v32 = vpop.xlane.xlu0 %1277 }
 0xc7c   : > { %v1279_v34 = vmul.f32 %v1278_v32, %v2040_v45 }
 0xc7e   : > { %v1280_v35 = vadd.f32 1e-05, %v1279_v34 }
 0xc80   : > { %1675 = vrsqrt.f32 %v1280_v35  ;;  %vm1287_vm14 = vweird.f32 %v1280_v35 }
 0xc86   : > { %v1676_v33 = vpop.eup %1675 }
 0xc87   : > { %v1282_v36 = vmul.f32 %v1676_v33, %v1280_v35  ;;  %vm1288_vm13 = vweird.f32 %v1676_v33 }
 0xc88   : > { %vm1289_vm15 = vmor %vm1287_vm14, %vm1288_vm13 }
 0xc89   : > { %v1283_v44 = vmul.f32 %v1676_v33, %v1282_v36 }
 0xc8b   : > { %v1284_v37 = vmul.f32 0.5, %v1283_v44 }
 0xc8d   : > { %v1285_v38 = vsub.f32 1.5, %v1284_v37 }
 0xc8f   : > { %v1286_v40 = vmul.f32 %v1676_v33, %v1285_v38 }
 0xc91   : > { %v1290_v42 = vsel %vm1289_vm15, %v1676_v33, %v1286_v40 }
 0xc92   : > { %v1291_v43 = vmul.f32 %v1290_v42, %v1274_v29 }
 0xc94   : > { %v1292_v46 = vmul.f32 %v2066_v63, %v1291_v43 }
 0xc96   : > { %v1293_v47 = vadd.f32 %v2071_v5, %v1292_v46 }
 0xc98   : > { %v1294_v48 = vpack.c.bf16 %v1293_v47, %v1293_v47 }
 0xc9a   : > { %1544 = vmatmul.msk.bf16.vlgmr.msrb.gmra.mxu1 %vm553_vm0, %v1294_v48 }
 0xd17   : > { %v1307_v49 = vpop.f32.mrf.mxu1 }
 0xd18   : > { %v1308_v2 = vadd.f32 %v2091_v12, %v1307_v49 }
 0xd1a   : > { %v1311_v54 = vmax.f32 %v1308_v2, 0.0 }
 0xd1c   : > { %v1312_v4 = vpack.c.bf16 %v1311_v54, %v1311_v54 }
 0xd1e   : > { %1545 = vmatmul.msk.bf16.vlgmr.msrb.gmra.mxu3 %vm946_vm9, %v1312_v4 }
 0xd1f   : > { %v1309_v56 = vpop.f32.mrf.mxu1 }
 0xda1   : > { %v1325_v57 = vpop.f32.mrf.mxu3 }
 0xda2   : > { %v1326_v58 = vadd.f32 %v2098_v18, %v1325_v57 }
 0xda4   : > { %v1329_v59 = vadd.f32 %v1326_v58, %v1293_v47 }
 0xda6   : > { %v1330_v60 = vsel %vm553_vm0, %v1329_v59, 0.0 }
 0xda7   : > { %1331 = vadd.xlane.f32.xlu2 %v1330_v60 }
 0xda9   : > { %v1327_v63 = vpop.f32.mrf.mxu3 }
 0xe1a   : > { %v1332_v5 = vpop.xlane.xlu2 %1331 }
 0xe1b   : > { %v1333_v53 = vmul.f32 %v1332_v5, %v2040_v45 }
 0xe1d   : > { %v1334_v61 = vsub.f32 %v1329_v59, %v1333_v53 }
 0xe1f   : > { %v1335_v62 = vmul.f32 %v1334_v61, %v1334_v61 }
 0xe21   : > { %v1336_v12 = vsel %vm553_vm0, %v1335_v62, 0.0 }
 0xe22   : > { %1337 = vadd.xlane.f32.xlu1 %v1336_v12 }
 0xe95   : > { %v1338_v3 = vpop.xlane.xlu1 %1337 }
 0xe96   : > { %v1339_v6 = vmul.f32 %v1338_v3, %v2040_v45 }
 0xe98   : > { %v1340_v24 = vadd.f32 1e-05, %v1339_v6 }
 0xe9a   : > { %1677 = vrsqrt.f32 %v1340_v24  ;;  %vm1347_vm2 = vweird.f32 %v1340_v24 }
 0xea0   : > { %v1678_v25 = vpop.eup %1677 }
 0xea1   : > { %v1342_v18 = vmul.f32 %v1678_v25, %v1340_v24  ;;  %vm1348_vm1 = vweird.f32 %v1678_v25 }
 0xea2   : > { %vm1349_vm3 = vmor %vm1347_vm2, %vm1348_vm1 }
 0xea3   : > { %v1343_v7 = vmul.f32 %v1678_v25, %v1342_v18 }
 0xea5   : > { %v1344_v8 = vmul.f32 0.5, %v1343_v7 }
 0xea7   : > { %v1345_v9 = vsub.f32 1.5, %v1344_v8 }
 0xea9   : > { %v1346_v50 = vmul.f32 %v1678_v25, %v1345_v9 }
 0xeab   : > { %v1350_v51 = vsel %vm1349_vm3, %v1678_v25, %v1346_v50 }
 0xeac   : > { %v1351_v13 = vmul.f32 %v1350_v51, %v1334_v61 }
 0xeae   : > { %v1352_v52 = vmul.f32 %v2108_v39, %v1351_v13 }
 0xeb0   : > { %v1353_v55 = vadd.f32 %v2113_v41, %v1352_v52 }
 0xeb2   : > { %v1356_v14 = vsel %vm553_vm0, %v1353_v55, 0.0 }
 0xeb3   : > { %1357 = vadd.xlane.f32.xlu0 %v1356_v14 }
 0xf26   : > { %v1358_v15 = vpop.xlane.xlu0 %1357 }
 0xf27   : > { %v1359_v10 = vmul.f32 %v1358_v15, %v2040_v45 }
 0xf29   : > { %v1360_v11 = vsub.f32 %v1353_v55, %v1359_v10 }
 0xf2b   : > { %v1361_v16 = vmul.f32 %v1360_v11, %v1360_v11 }
 0xf2d   : > { %v1362_v17 = vsel %vm553_vm0, %v1361_v16, 0.0 }
 0xf2e   : > { %1363 = vadd.xlane.f32.xlu2 %v1362_v17 }
 0xfa1   : > { %v1364_v19 = vpop.xlane.xlu2 %1363 }
 0xfa2   : > { %v1365_v0 = vmul.f32 %v1364_v19, %v2040_v45 }
 0xfa4   : > { %v1366_v1 = vadd.f32 1e-05, %v1365_v0 }
 0xfa6   : > { %1679 = vrsqrt.f32 %v1366_v1  ;;  %vm1373_vm5 = vweird.f32 %v1366_v1 }
 0xfac   : > { %v1680_v39 = vpop.eup %1679 }
 0xfad   : > { %v1368_v41 = vmul.f32 %v1680_v39, %v1366_v1  ;;  %vm1374_vm4 = vweird.f32 %v1680_v39 }
 0xfae   : > { %vm1375_vm6 = vmor %vm1373_vm5, %vm1374_vm4 }
 0xfaf   : > { %v1369_v20 = vmul.f32 %v1680_v39, %v1368_v41 }
 0xfb1   : > { %v1370_v21 = vmul.f32 0.5, %v1369_v20 }
 0xfb3   : > { %v1371_v22 = vsub.f32 1.5, %v1370_v21 }
 0xfb5   : > { %v1372_v23 = vmul.f32 %v1680_v39, %v1371_v22 }
 0xfb7   : > { %v1376_v45 = vsel %vm1375_vm6, %v1680_v39, %v1372_v23 }
 0xfb8   : > { %v1377_v27 = vmul.f32 %v1376_v45, %v1360_v11 }
 0xfba   : > { %v1381_v29 = vmul.f32 %v1635_v26, %v1377_v27 }
 0xfbc   : > { %v1385_v30 = vadd.f32 %v1636_v28, %v1381_v29 }
 0xfbe   : > { %1386 = vst.msk [vmem:[%s502_s7] sm:$0xff] %vm553_vm0, %v1385_v30 }
 0xfbf   : > { %1738 = shalt.err (!%p1735_p8)
}
 0xfc0   : > { %1564 = dma.vmem_to_hbm [thread:$0]  (%p1915_p5), %s1401_s22, 128, %s1403_s0, %s1388_s24  }
 0xfc1 PF: > { %p1576_p9 = scmp.ge.s32.totalorder %s1777_s21, 2  ;;  %s1414_s17 = sand.u32 1, %s1765_s18  }
 0xfc2   : > { %s1415_s7 = scalar_lea.sflag [#allocation4], %s1414_s17 }
 0xfc3   : > { %p1571_p10 = pnand %p1576_p9, %p1919_p6 }
 0xfc5   : > { %p1572_p11 = pneg %p1571_p10 }
 0xfc7   : > { %1760 = dma.done.wait (%p1572_p11), %s1415_s7, 128  }
 0xfc8   : > { %1762 = vsyncadd (%p1572_p11), %s1415_s7, 4294967168  ;;  %s2296_s21 = sld [smem:[#allocation9_spill]]  ;;  %s2299_s18 = smov %s1769_s19 }
 0xfc9   : > { %s2297_s29 = sld [smem:[#allocation8_spill]] }
 0xfca   : > { %s2298_s20 = sld [smem:[#allocation10_spill]] }
 0xfce   : > { %p26_p12 = scmp.ge.s32.totalorder %s2296_s21, 4  }
 0xfcf   : > { %s2300_s19 = smov %s2297_s29 }
 0xfd0   :  { %28 = sbr.rel (!%p26_p12) target bundleno = 7 (0x7), region = 120 }
 0xfd5   :  { %1421 = vsyncpa [#allocation3], 1 }
 0xfd6   :  { %1423 = vsyncpa [#allocation3 + $0x1], 1 }
 0xfd7   :  { %1424 = vsyncpa [#allocation4], 1 }
 0xfd8   :  { %1426 = vsyncpa [#allocation4 + $0x1], 1 }

</bundles_post_ra>
